<compile_context>
chip_gen: v7x
topology: tpu7x:2x2x1
jax: 0.10.0
libtpu: 0.0.40
codegen_flags: <defaults>
</compile_context>

<pallas_src>
import math
from functools import partial

import jax
import jax.numpy as jnp
from jax.experimental import pallas as pl
from jax.experimental.pallas import tpu as pltpu

LAYER_NORM_EPS = 1e-12
_F32 = jnp.float32
_BF16 = jnp.bfloat16


# ----------------------------- kernel helpers ------------------------------
def _layer_norm(x, gamma, beta):
    mean = jnp.mean(x, axis=-1, keepdims=True)
    var = jnp.mean(jnp.square(x - mean), axis=-1, keepdims=True)
    return (x - mean) * jax.lax.rsqrt(var + LAYER_NORM_EPS) * gamma + beta


def _gelu(x):
    # TODO(synk): original BERT uses the exact erf-based GELU; the tanh
    # approximation differs only at ~1e-3 tolerance level.
    return 0.5 * x * (1.0 + jnp.tanh(0.7978845608028654 * (x + 0.044715 * x * x * x)))


# ------------------------------ fused Pallas kernel --------------------------
def fused_bert_kernel(num_heads, bt, seq,
                      slot_ref, req_ref,
                      emb_ref, mask_ref, embg_ref, embb_ref,
                      wqkv_ref, bqkv_ref, wo_ref, bo_ref,
                      ln1g_ref, ln1b_ref, w1_ref, b1_ref,
                      w2_ref, b2_ref, ln2g_ref, ln2b_ref,
                      out_ref, h_ref):
    """Grid = (batch_blocks, layers).  h_ref: layer-resident activation scratch."""
    l = pl.program_id(1)
    n_layers = pl.num_programs(1)

    # Layer 0 of each batch block: embedding-sum LayerNorm -> resident scratch.
    @pl.when(l == 0)
    def _():
        h_ref[...] = _layer_norm(emb_ref[...], embg_ref[...], embb_ref[...])

    x = h_ref[...]                      # (bt*seq, H) f32, stays in VMEM
    n_tok, H = x.shape
    nh = num_heads
    dh = H // nh
    scale = 1.0 / math.sqrt(dh)

    xb = x.astype(_BF16)

    # Fused QKV: one (bt*seq, H) @ (H, 3H) MXU matmul.
    qkv = jnp.dot(xb, wqkv_ref[0], preferred_element_type=_F32) + bqkv_ref[0]

    def to_heads(t):
        # (bt*seq, H) -> (bt*nh, seq, dh): single reshape + transpose per tensor.
        t4 = t.reshape(bt, seq, nh, dh)
        return jnp.transpose(t4, (0, 2, 1, 3)).reshape(bt * nh, seq, dh).astype(_BF16)

    qh = to_heads(qkv[:, :H])
    kh = to_heads(qkv[:, H:2 * H])
    vh = to_heads(qkv[:, 2 * H:])

    # Batched-head attention: one dot_general per einsum, softmax stats in f32.
    # TODO(synk): KV-tile (flash-style) for long sequences on v7x.
    scores = jnp.einsum('nqd,nkd->nqk', qh, kh, preferred_element_type=_F32) * scale
    mask = jnp.broadcast_to(mask_ref[...][:, None, :, :],
                            (bt, nh, 1, seq)).reshape(bt * nh, 1, seq)
    scores = scores + mask
    scores = scores - jnp.max(scores, axis=-1, keepdims=True)
    p = jnp.exp(scores)
    p = p * pl.reciprocal(jnp.sum(p, axis=-1, keepdims=True), approx=True)
    ctx = jnp.einsum('nqk,nkd->nqd', p.astype(_BF16), vh,
                     preferred_element_type=_F32)              # (bt*nh, seq, dh)
    ctx2d = jnp.transpose(ctx.reshape(bt, nh, seq, dh),
                          (0, 2, 1, 3)).reshape(bt * seq, H)

    attn = jnp.dot(ctx2d.astype(_BF16), wo_ref[0],
                   preferred_element_type=_F32) + bo_ref[0]
    x1 = _layer_norm(x + attn, ln1g_ref[0], ln1b_ref[0])

    mid = _gelu(jnp.dot(x1.astype(_BF16), w1_ref[0],
                        preferred_element_type=_F32) + b1_ref[0])
    ff = jnp.dot(mid.astype(_BF16), w2_ref[0],
                 preferred_element_type=_F32) + b2_ref[0]
    y = _layer_norm(x1 + ff, ln2g_ref[0], ln2b_ref[0])

    # Carry to the next layer; skip the redundant full-width store on the last
    # layer of the stack (single vector-store slot on v5e).
    @pl.when(l + 1 < n_layers)
    def _():
        h_ref[...] = y

    # Only requested layers write their hidden state; unrequested layers map to
    # the next requested layer's output slot, which overwrites the VMEM block
    # before it is written back to HBM.
    @pl.when(req_ref[l] == 1)
    def _():
        out_ref[0] = y


# ------------------------------ pallas_call wrapper --------------------------
def _vmem_limit_bytes():
    try:
        cap = int(pltpu.get_tpu_info().vmem_capacity_bytes)
    except Exception:
        cap = 64 * 1024 * 1024     # conservative (v7x physical)
    return min(int(cap * 0.85), 100 * 1024 * 1024)


def _pick_bt(batch, seq, target_tokens=1024):
    """Sequences per grid step: big enough to amortize the per-layer weight DMA
    (~bt*seq >= 512-1024 tokens), while keeping >= 2 batch blocks (megacore)
    when that does not starve the step of tokens."""
    divisors = [d for d in range(1, batch + 1) if batch % d == 0]
    fitting = [d for d in divisors if d * seq <= target_tokens] or [1]
    bt = max(fitting)
    if batch // bt < 2:
        halves = [d for d in fitting if batch // d >= 2]
        if halves and max(halves) * seq >= 512:
            bt = max(halves)
    return bt


def bert_forward(emb_sum, mask_b, emb_ln_g, emb_ln_b, stacked,
                 layer_slot, layer_req, n_req, num_heads, batch, seq, bt):
    L_run = int(layer_slot.shape[0])
    T, H = emb_sum.shape
    I = stacked["w1"].shape[-1]
    nh = num_heads
    n_b = batch // bt
    dh = H // nh

    # index_maps receive (grid_b, grid_l, *scalar_prefetch_refs)
    def const2(b, l, slot, req): return (0, 0)
    def by_batch2(b, l, slot, req): return (b, 0)
    def by_batch3(b, l, slot, req): return (b, 0, 0)
    def by_layer(b, l, slot, req): return (l, 0, 0)
    def out_map(b, l, slot, req): return (slot[l], b, 0)

    in_specs = [
        pl.BlockSpec((bt * seq, H), by_batch2),          # embedding sum
        pl.BlockSpec((bt, 1, seq), by_batch3),           # additive mask (B,1,S)
        pl.BlockSpec((1, H), const2),                    # emb LN gamma
        pl.BlockSpec((1, H), const2),                    # emb LN beta
        pl.BlockSpec((1, H, 3 * H), by_layer),           # fused Wqkv
        pl.BlockSpec((1, 1, 3 * H), by_layer),           # fused bqkv
        pl.BlockSpec((1, H, H), by_layer),               # Wo
        pl.BlockSpec((1, 1, H), by_layer),               # bo
        pl.BlockSpec((1, 1, H), by_layer),               # ln1 gamma
        pl.BlockSpec((1, 1, H), by_layer),               # ln1 beta
        pl.BlockSpec((1, H, I), by_layer),               # FFN W1
        pl.BlockSpec((1, 1, I), by_layer),               # FFN b1
        pl.BlockSpec((1, I, H), by_layer),               # FFN W2
        pl.BlockSpec((1, 1, H), by_layer),               # FFN b2
        pl.BlockSpec((1, 1, H), by_layer),               # ln2 gamma
        pl.BlockSpec((1, 1, H), by_layer),               # ln2 beta
    ]

    # Advisory cost estimate; weights re-stream once per batch block (n_b x).
    weight_bytes = L_run * (3 * H * H + H * H + 2 * H * I) * 2   # bf16
    matmul_flops = L_run * 2 * T * (4 * H * H + 2 * H * I)
    attn_flops = L_run * 4 * batch * nh * seq * seq * dh
    cost = pl.CostEstimate(
        flops=int(matmul_flops + attn_flops),
        transcendentals=int(L_run * (batch * nh * seq * seq + T * I)),
        bytes_accessed=int(n_b * weight_bytes + T * H * 4
                           + batch * seq * 4 + n_req * T * H * 4),
    )

    grid_spec = pltpu.PrefetchScalarGridSpec(
        num_scalar_prefetch=2,
        grid=(n_b, L_run),
        in_specs=in_specs,
        out_specs=pl.BlockSpec((1, bt * seq, H), out_map),
        scratch_shapes=[pltpu.VMEM((bt * seq, H), jnp.float32)],
    )

    return pl.pallas_call(
        partial(fused_bert_kernel, num_heads, bt, seq),
        out_shape=jax.ShapeDtypeStruct((n_req, T, H), jnp.float32),
        grid_spec=grid_spec,
        compiler_params=pltpu.CompilerParams(
            dimension_semantics=("parallel", "arbitrary"),
            vmem_limit_bytes=_vmem_limit_bytes()),
        cost_estimate=cost,
    )(layer_slot, layer_req,
      emb_sum, mask_b, emb_ln_g, emb_ln_b,
      stacked["wqkv"], stacked["bqkv"], stacked["wo"], stacked["bo"],
      stacked["ln1_g"], stacked["ln1_b"], stacked["w1"], stacked["b1"],
      stacked["w2"], stacked["b2"], stacked["ln2_g"], stacked["ln2_b"])


# ------------------------------ the module ----------------------------------
class BertWordPieceEncoder:
    """JAX/Pallas re-implementation of fastNLP's BertWordPieceEncoder.forward.

    Parameters are synthetic (deterministic PRNGKey init) instead of a
    pretrained checkpoint; `layers` follows the original "comma-separated,
    negative indices allowed" convention.
    """

    def __init__(self, vocab_size=100, hidden_size=128, num_hidden_layers=2,
                 num_heads=4, intermediate_size=256, max_position=64,
                 type_vocab_size=2, layers="-1", pad_index=0, seed=0):
        assert hidden_size % num_heads == 0
        self.vocab_size = vocab_size
        self.hidden_size = hidden_size
        self.num_hidden_layers = num_hidden_layers
        self.num_heads = num_heads
        self.max_position = max_position
        self.pad_index = pad_index

        self.layers = [int(l) for l in layers.split(",")]
        for l in self.layers:
            assert -num_hidden_layers <= l < num_hidden_layers
        self._embed_size = len(self.layers) * hidden_size

        # Static layer schedule: run only up to the deepest requested layer and
        # map every run-layer to the output slot it must (eventually) fill.
        pos_layers = [l % num_hidden_layers for l in self.layers]
        uniq = sorted(set(pos_layers))
        self._pos_layers = pos_layers
        self._uniq_layers = uniq
        self._slot_of = {l: i for i, l in enumerate(uniq)}
        self._layers_to_run = uniq[-1] + 1
        slot_arr, req_arr = [], []
        for l in range(self._layers_to_run):
            nxt = min(u for u in uniq if u >= l)
            slot_arr.append(self._slot_of[nxt])
            req_arr.append(1 if l in self._slot_of else 0)
        self._layer_slot = jnp.asarray(slot_arr, jnp.int32)
        self._layer_req = jnp.asarray(req_arr, jnp.int32)

        key = jax.random.PRNGKey(seed)
        keys = jax.random.split(key, 3 + num_hidden_layers)
        std = 0.02
        self.word_emb = jax.random.normal(keys[0], (vocab_size, hidden_size), _F32) * std
        self.pos_emb = jax.random.normal(keys[1], (max_position, hidden_size), _F32) * std
        self.type_emb = jax.random.normal(keys[2], (type_vocab_size, hidden_size), _F32) * std
        self.emb_ln_g = jnp.ones((1, hidden_size), _F32)
        self.emb_ln_b = jnp.zeros((1, hidden_size), _F32)

        H, I, L = hidden_size, intermediate_size, num_hidden_layers
        wqkv, wo, w1, w2 = [], [], [], []
        for i in range(L):
            lk = jax.random.split(keys[3 + i], 6)
            wq = jax.random.normal(lk[0], (H, H), _F32) * std
            wk = jax.random.normal(lk[1], (H, H), _F32) * std
            wv = jax.random.normal(lk[2], (H, H), _F32) * std
            wqkv.append(jnp.concatenate([wq, wk, wv], axis=-1))   # (H, 3H)
            wo.append(jax.random.normal(lk[3], (H, H), _F32) * std)
            w1.append(jax.random.normal(lk[4], (H, I), _F32) * std)
            w2.append(jax.random.normal(lk[5], (I, H), _F32) * std)

        # Stacked per-layer params: bf16 matmul weights, f32 biases / LN params.
        self.stacked = {
            "wqkv": jnp.stack(wqkv).astype(_BF16),        # (L, H, 3H)
            "bqkv": jnp.zeros((L, 1, 3 * H), _F32),
            "wo": jnp.stack(wo).astype(_BF16),            # (L, H, H)
            "bo": jnp.zeros((L, 1, H), _F32),
            "ln1_g": jnp.ones((L, 1, H), _F32),
            "ln1_b": jnp.zeros((L, 1, H), _F32),
            "w1": jnp.stack(w1).astype(_BF16),            # (L, H, I)
            "b1": jnp.zeros((L, 1, I), _F32),
            "w2": jnp.stack(w2).astype(_BF16),            # (L, I, H)
            "b2": jnp.zeros((L, 1, H), _F32),
            "ln2_g": jnp.ones((L, 1, H), _F32),
            "ln2_b": jnp.zeros((L, 1, H), _F32),
        }

    @property
    def embed_size(self):
        return self._embed_size

    def __call__(self, word_pieces, token_type_ids=None):
        B, S = word_pieces.shape
        H = self.hidden_size
        nh = self.num_heads
        assert S <= self.max_position, "sequence longer than max_position embeddings"
        if token_type_ids is None:
            token_type_ids = jnp.zeros((B, S), jnp.int32)

        # Pad seq to a sublane multiple (padding positions are masked out of
        # attention and sliced off at the end) instead of collapsing bt to B.
        S_pad = ((S + 7) // 8) * 8
        if S_pad != S:
            pad = ((0, 0), (0, S_pad - S))
            word_pieces = jnp.pad(word_pieces, pad, constant_values=self.pad_index)
            token_type_ids = jnp.pad(token_type_ids, pad, constant_values=0)

        # Additive attention mask from padding: (B, 1, S_pad). The per-head
        # broadcast happens inside the kernel (no nh-fold HBM replication).
        valid = (word_pieces != self.pad_index)
        mask_b = jnp.where(valid, 0.0, -10000.0).astype(_F32)[:, None, :]

        # TODO(synk): embedding gathers stay as XLA glue; an SMEM-prefetched
        # in-kernel gather (PrefetchScalarGridSpec + pl.Element) would remove
        # the (B,S,H) HBM round-trip at real sizes.
        word_e = jnp.take(self.word_emb, word_pieces, axis=0)           # (B, S_pad, H)
        type_e = jnp.take(self.type_emb, token_type_ids, axis=0)        # (B, S_pad, H)
        pos_e = jnp.zeros((S_pad, H), _F32).at[:S].set(self.pos_emb[:S])
        emb_sum = (word_e + pos_e[None] + type_e).reshape(B * S_pad, H)

        bt = _pick_bt(B, S_pad)
        n_req = len(self._uniq_layers)

        hs = bert_forward(emb_sum, mask_b, self.emb_ln_g, self.emb_ln_b,
                          self.stacked, self._layer_slot, self._layer_req,
                          n_req, nh, B, S_pad, bt)          # (n_req, B*S_pad, H)
        hs = hs.reshape(n_req, B, S_pad, H)[:, :, :S, :]
        # torch.cat([*outputs], dim=-1) over the requested layers, in order.
        return jnp.concatenate([hs[self._slot_of[l]] for l in self._pos_layers],
                               axis=-1)


# --------------------------------- main --------------------------------------
if __name__ == "__main__":
    B, S, H = 2, 8, 128
    enc = BertWordPieceEncoder(vocab_size=100, hidden_size=H, num_hidden_layers=2,
                               num_heads=4, intermediate_size=256,
                               layers="-2,-1", seed=0)

    key = jax.random.PRNGKey(0)
    k_ids, _ = jax.random.split(key)
    word_pieces = jax.random.randint(k_ids, (B, S), 1, 100, dtype=jnp.int32)
    # make a couple of positions padding to exercise the attention mask
    word_pieces = word_pieces.at[1, -2:].set(0)
    token_type_ids = jnp.zeros((B, S), jnp.int32)

    out = enc(word_pieces, token_type_ids)
    out = jax.block_until_ready(out)

    assert out.shape == (B, S, enc.embed_size), out.shape
    assert out.dtype == jnp.float32
    assert bool(jnp.all(jnp.isfinite(out)))
    print("KERNEL_OK")
</pallas_src>

<mosaic_0001>
module attributes {stable_mosaic.version = 11 : i64} {
  func.func @fused_bert_kernel(%arg0: i32, %arg1: i32, %arg2: memref<2xi32, #tpu.memory_space<smem>>, %arg3: memref<2xi32, #tpu.memory_space<smem>>, %arg4: memref<16x128xf32, #tpu.memory_space<vmem>>, %arg5: memref<2x1x8xf32, #tpu.memory_space<vmem>>, %arg6: memref<1x128xf32, #tpu.memory_space<vmem>>, %arg7: memref<1x128xf32, #tpu.memory_space<vmem>>, %arg8: memref<1x128x384xbf16, #tpu.memory_space<vmem>>, %arg9: memref<1x1x384xf32, #tpu.memory_space<vmem>>, %arg10: memref<1x128x128xbf16, #tpu.memory_space<vmem>>, %arg11: memref<1x1x128xf32, #tpu.memory_space<vmem>>, %arg12: memref<1x1x128xf32, #tpu.memory_space<vmem>>, %arg13: memref<1x1x128xf32, #tpu.memory_space<vmem>>, %arg14: memref<1x128x256xbf16, #tpu.memory_space<vmem>>, %arg15: memref<1x1x256xf32, #tpu.memory_space<vmem>>, %arg16: memref<1x256x128xbf16, #tpu.memory_space<vmem>>, %arg17: memref<1x1x128xf32, #tpu.memory_space<vmem>>, %arg18: memref<1x1x128xf32, #tpu.memory_space<vmem>>, %arg19: memref<1x1x128xf32, #tpu.memory_space<vmem>>, %arg20: memref<1x16x128xf32, #tpu.memory_space<vmem>>, %arg21: memref<16x128xf32, #tpu.memory_space<vmem>>) attributes {dimension_semantics = [#tpu.dimension_semantics<parallel>, #tpu.dimension_semantics<arbitrary>], iteration_bounds = array<i64: 1, 2>, scalar_prefetch = 2 : i64, scratch_operands = 1 : i64, tpu.core_type = #tpu.core_type<tc>, window_params = [{transform_indices = @transform_0, window_bounds = array<i64: 16, 128>}, {transform_indices = @transform_1, window_bounds = array<i64: 2, 1, 8>}, {pipeline_mode = #tpu.pipeline_mode<synchronous>, transform_indices = @transform_2, window_bounds = array<i64: 1, 128>}, {pipeline_mode = #tpu.pipeline_mode<synchronous>, transform_indices = @transform_3, window_bounds = array<i64: 1, 128>}, {transform_indices = @transform_4, window_bounds = array<i64: 1, 128, 384>}, {transform_indices = @transform_5, window_bounds = array<i64: 1, 1, 384>}, {transform_indices = @transform_6, window_bounds = array<i64: 1, 128, 128>}, {transform_indices = @transform_7, window_bounds = array<i64: 1, 1, 128>}, {transform_indices = @transform_8, window_bounds = array<i64: 1, 1, 128>}, {transform_indices = @transform_9, window_bounds = array<i64: 1, 1, 128>}, {transform_indices = @transform_10, window_bounds = array<i64: 1, 128, 256>}, {transform_indices = @transform_11, window_bounds = array<i64: 1, 1, 256>}, {transform_indices = @transform_12, window_bounds = array<i64: 1, 256, 128>}, {transform_indices = @transform_13, window_bounds = array<i64: 1, 1, 128>}, {transform_indices = @transform_14, window_bounds = array<i64: 1, 1, 128>}, {transform_indices = @transform_15, window_bounds = array<i64: 1, 1, 128>}, {transform_indices = @transform_16, window_bounds = array<i64: 1, 16, 128>}]} {
    %c0_i32 = arith.constant 0 : i32
    %0 = arith.cmpi eq, %arg1, %c0_i32 : i32
    %1 = arith.extui %0 : i1 to i32
    %c0_i32_0 = arith.constant 0 : i32
    %2 = arith.cmpi ne, %1, %c0_i32_0 : i32
    scf.if %2 {
      %c0_66 = arith.constant 0 : index
      %c0_67 = arith.constant 0 : index
      %152 = vector.load %arg4[%c0_66, %c0_67] : memref<16x128xf32, #tpu.memory_space<vmem>>, vector<16x128xf32>
      %c0_68 = arith.constant 0 : index
      %c0_69 = arith.constant 0 : index
      %153 = vector.load %arg6[%c0_68, %c0_69] : memref<1x128xf32, #tpu.memory_space<vmem>>, vector<1x128xf32>
      %c0_70 = arith.constant 0 : index
      %c0_71 = arith.constant 0 : index
      %154 = vector.load %arg7[%c0_70, %c0_71] : memref<1x128xf32, #tpu.memory_space<vmem>>, vector<1x128xf32>
      %cst_72 = arith.constant dense<0.000000e+00> : vector<16xf32>
      %155 = vector.multi_reduction <add>, %152, %cst_72 [1] : vector<16x128xf32> to vector<16xf32>
      %156 = vector.shape_cast %155 : vector<16xf32> to vector<16x1xf32>
      %cst_73 = arith.constant 1.280000e+02 : f32
      %157 = vector.broadcast %cst_73 : f32 to vector<16x1xf32>
      %158 = arith.divf %156, %157 : vector<16x1xf32>
      %159 = vector.broadcast %158 : vector<16x1xf32> to vector<16x128xf32>
      %160 = arith.subf %152, %159 : vector<16x128xf32>
      %161 = arith.mulf %160, %160 : vector<16x128xf32>
      %cst_74 = arith.constant dense<0.000000e+00> : vector<16xf32>
      %162 = vector.multi_reduction <add>, %161, %cst_74 [1] : vector<16x128xf32> to vector<16xf32>
      %163 = vector.shape_cast %162 : vector<16xf32> to vector<16x1xf32>
      %cst_75 = arith.constant 1.280000e+02 : f32
      %164 = vector.broadcast %cst_75 : f32 to vector<16x1xf32>
      %165 = arith.divf %163, %164 : vector<16x1xf32>
      %166 = vector.broadcast %158 : vector<16x1xf32> to vector<16x128xf32>
      %167 = arith.subf %152, %166 : vector<16x128xf32>
      %cst_76 = arith.constant 9.99999996E-13 : f32
      %168 = vector.broadcast %cst_76 : f32 to vector<16x1xf32>
      %169 = arith.addf %165, %168 : vector<16x1xf32>
      %170 = math.rsqrt %169 : vector<16x1xf32>
      %171 = vector.broadcast %170 : vector<16x1xf32> to vector<16x128xf32>
      %172 = arith.mulf %167, %171 : vector<16x128xf32>
      %173 = vector.broadcast %153 : vector<1x128xf32> to vector<16x128xf32>
      %174 = arith.mulf %172, %173 : vector<16x128xf32>
      %175 = vector.broadcast %154 : vector<1x128xf32> to vector<16x128xf32>
      %176 = arith.addf %174, %175 : vector<16x128xf32>
      %c0_77 = arith.constant 0 : index
      %c0_78 = arith.constant 0 : index
      %177 = vector.load %arg21[%c0_77, %c0_78] : memref<16x128xf32, #tpu.memory_space<vmem>>, vector<16x128xf32>
      tpu.vector_store %arg21[%c0_77, %c0_78], %176 {strides = array<i32>} : memref<16x128xf32, #tpu.memory_space<vmem>>, vector<16x128xf32>,
    } else {
    }
    %c0 = arith.constant 0 : index
    %c0_1 = arith.constant 0 : index
    %3 = vector.load %arg21[%c0, %c0_1] : memref<16x128xf32, #tpu.memory_space<vmem>>, vector<16x128xf32>
    %4 = arith.truncf %3 : vector<16x128xf32> to vector<16x128xbf16>
    %c0_2 = arith.constant 0 : index
    %c0_3 = arith.constant 0 : index
    %c0_4 = arith.constant 0 : index
    %5 = vector.load %arg8[%c0_2, %c0_3, %c0_4] : memref<1x128x384xbf16, #tpu.memory_space<vmem>>, vector<1x128x384xbf16>
    %6 = vector.shape_cast %5 : vector<1x128x384xbf16> to vector<128x384xbf16>
    %cst = arith.constant dense<0.000000e+00> : vector<16x384xf32>
    %7 = tpu.matmul %4, %6, %cst {dimension_numbers = #tpu.dot_dimension_numbers<[1], [0], [0], [1], [0, 0, 1, 1], [], []>} : vector<16x128xbf16>, vector<128x384xbf16>, vector<16x384xf32> -> vector<16x384xf32>
    %c0_5 = arith.constant 0 : index
    %c0_6 = arith.constant 0 : index
    %c0_7 = arith.constant 0 : index
    %8 = vector.load %arg9[%c0_5, %c0_6, %c0_7] : memref<1x1x384xf32, #tpu.memory_space<vmem>>, vector<1x1x384xf32>
    %9 = vector.shape_cast %8 : vector<1x1x384xf32> to vector<1x384xf32>
    %10 = vector.broadcast %9 : vector<1x384xf32> to vector<16x384xf32>
    %11 = arith.addf %7, %10 : vector<16x384xf32>
    %12 = vector.extract_strided_slice %11 {offsets = [0, 0], sizes = [16, 128], strides = [1, 1]} : vector<16x384xf32> to vector<16x128xf32>
    %13 = vector.shape_cast %12 : vector<16x128xf32> to vector<2x8x4x32xf32>
    %14 = tpu.transpose %13, [0, 2, 1, 3] : vector<2x8x4x32xf32> -> vector<2x4x8x32xf32>
    %15 = vector.shape_cast %14 : vector<2x4x8x32xf32> to vector<8x8x32xf32>
    %16 = arith.truncf %15 : vector<8x8x32xf32> to vector<8x8x32xbf16>
    %17 = vector.extract_strided_slice %11 {offsets = [0, 128], sizes = [16, 128], strides = [1, 1]} : vector<16x384xf32> to vector<16x128xf32>
    %18 = vector.shape_cast %17 : vector<16x128xf32> to vector<2x8x4x32xf32>
    %19 = tpu.transpose %18, [0, 2, 1, 3] : vector<2x8x4x32xf32> -> vector<2x4x8x32xf32>
    %20 = vector.shape_cast %19 : vector<2x4x8x32xf32> to vector<8x8x32xf32>
    %21 = arith.truncf %20 : vector<8x8x32xf32> to vector<8x8x32xbf16>
    %22 = vector.extract_strided_slice %11 {offsets = [0, 256], sizes = [16, 128], strides = [1, 1]} : vector<16x384xf32> to vector<16x128xf32>
    %23 = vector.shape_cast %22 : vector<16x128xf32> to vector<2x8x4x32xf32>
    %24 = tpu.transpose %23, [0, 2, 1, 3] : vector<2x8x4x32xf32> -> vector<2x4x8x32xf32>
    %25 = vector.shape_cast %24 : vector<2x4x8x32xf32> to vector<8x8x32xf32>
    %26 = arith.truncf %25 : vector<8x8x32xf32> to vector<8x8x32xbf16>
    "tpu.trace_start"() <{level = 10 : i32, message = "nqd,nkd->nqk"}> : () -> ()
    %cst_8 = arith.constant dense<0.000000e+00> : vector<8x8x8xf32>
    %27 = tpu.matmul %16, %21, %cst_8 {dimension_numbers = #tpu.dot_dimension_numbers<[2], [2], [1], [1], [0, 0, 0, 1, 1, 1], [0], [0]>} : vector<8x8x32xbf16>, vector<8x8x32xbf16>, vector<8x8x8xf32> -> vector<8x8x8xf32>
    "tpu.trace_stop"() : () -> ()
    %cst_9 = arith.constant 0.176776692 : f32
    %28 = vector.broadcast %cst_9 : f32 to vector<8x8x8xf32>
    %29 = arith.mulf %27, %28 : vector<8x8x8xf32>
    %c0_10 = arith.constant 0 : index
    %c0_11 = arith.constant 0 : index
    %c0_12 = arith.constant 0 : index
    %30 = vector.load %arg5[%c0_10, %c0_11, %c0_12] : memref<2x1x8xf32, #tpu.memory_space<vmem>>, vector<2x1x8xf32>
    %31 = vector.shape_cast %30 : vector<2x1x8xf32> to vector<2x1x1x8xf32>
    %32 = vector.shape_cast %31 : vector<2x1x1x8xf32> to vector<2x1x1x8xf32>
    %33 = vector.broadcast %32 : vector<2x1x1x8xf32> to vector<2x4x1x8xf32>
    %34 = vector.shape_cast %33 : vector<2x4x1x8xf32> to vector<8x1x8xf32>
    %35 = vector.broadcast %34 : vector<8x1x8xf32> to vector<8x8x8xf32>
    %36 = arith.addf %29, %35 : vector<8x8x8xf32>
    %cst_13 = arith.constant dense<0xFF800000> : vector<8x8xf32>
    %37 = vector.multi_reduction <maximumf>, %36, %cst_13 [2] : vector<8x8x8xf32> to vector<8x8xf32>
    %38 = vector.shape_cast %37 : vector<8x8xf32> to vector<8x8x1xf32>
    %39 = vector.broadcast %38 : vector<8x8x1xf32> to vector<8x8x8xf32>
    %40 = arith.subf %36, %39 : vector<8x8x8xf32>
    %41 = math.exp %40 : vector<8x8x8xf32>
    %cst_14 = arith.constant dense<0.000000e+00> : vector<8x8xf32>
    %42 = vector.multi_reduction <add>, %41, %cst_14 [2] : vector<8x8x8xf32> to vector<8x8xf32>
    %43 = vector.shape_cast %42 : vector<8x8xf32> to vector<8x8x1xf32>
    %44 = tpu.reciprocal %43 {approx = true} : vector<8x8x1xf32> -> vector<8x8x1xf32>
    %45 = vector.broadcast %44 : vector<8x8x1xf32> to vector<8x8x8xf32>
    %46 = arith.mulf %41, %45 : vector<8x8x8xf32>
    %47 = arith.truncf %46 : vector<8x8x8xf32> to vector<8x8x8xbf16>
    "tpu.trace_start"() <{level = 10 : i32, message = "nqk,nkd->nqd"}> : () -> ()
    %cst_15 = arith.constant dense<0.000000e+00> : vector<8x8x32xf32>
    %48 = tpu.matmul %47, %26, %cst_15 {dimension_numbers = #tpu.dot_dimension_numbers<[2], [1], [1], [2], [0, 0, 0, 1, 1, 2], [0], [0]>} : vector<8x8x8xbf16>, vector<8x8x32xbf16>, vector<8x8x32xf32> -> vector<8x8x32xf32>
    "tpu.trace_stop"() : () -> ()
    %49 = vector.shape_cast %48 : vector<8x8x32xf32> to vector<2x4x8x32xf32>
    %50 = tpu.transpose %49, [0, 2, 1, 3] : vector<2x4x8x32xf32> -> vector<2x8x4x32xf32>
    %51 = vector.shape_cast %50 : vector<2x8x4x32xf32> to vector<16x128xf32>
    %52 = arith.truncf %51 : vector<16x128xf32> to vector<16x128xbf16>
    %c0_16 = arith.constant 0 : index
    %c0_17 = arith.constant 0 : index
    %c0_18 = arith.constant 0 : index
    %53 = vector.load %arg10[%c0_16, %c0_17, %c0_18] : memref<1x128x128xbf16, #tpu.memory_space<vmem>>, vector<1x128x128xbf16>
    %54 = vector.shape_cast %53 : vector<1x128x128xbf16> to vector<128x128xbf16>
    %cst_19 = arith.constant dense<0.000000e+00> : vector<16x128xf32>
    %55 = tpu.matmul %52, %54, %cst_19 {dimension_numbers = #tpu.dot_dimension_numbers<[1], [0], [0], [1], [0, 0, 1, 1], [], []>} : vector<16x128xbf16>, vector<128x128xbf16>, vector<16x128xf32> -> vector<16x128xf32>
    %c0_20 = arith.constant 0 : index
    %c0_21 = arith.constant 0 : index
    %c0_22 = arith.constant 0 : index
    %56 = vector.load %arg11[%c0_20, %c0_21, %c0_22] : memref<1x1x128xf32, #tpu.memory_space<vmem>>, vector<1x1x128xf32>
    %57 = vector.shape_cast %56 : vector<1x1x128xf32> to vector<1x128xf32>
    %58 = vector.broadcast %57 : vector<1x128xf32> to vector<16x128xf32>
    %59 = arith.addf %55, %58 : vector<16x128xf32>
    %60 = arith.addf %3, %59 : vector<16x128xf32>
    %c0_23 = arith.constant 0 : index
    %c0_24 = arith.constant 0 : index
    %c0_25 = arith.constant 0 : index
    %61 = vector.load %arg12[%c0_23, %c0_24, %c0_25] : memref<1x1x128xf32, #tpu.memory_space<vmem>>, vector<1x1x128xf32>
    %62 = vector.shape_cast %61 : vector<1x1x128xf32> to vector<1x128xf32>
    %c0_26 = arith.constant 0 : index
    %c0_27 = arith.constant 0 : index
    %c0_28 = arith.constant 0 : index
    %63 = vector.load %arg13[%c0_26, %c0_27, %c0_28] : memref<1x1x128xf32, #tpu.memory_space<vmem>>, vector<1x1x128xf32>
    %64 = vector.shape_cast %63 : vector<1x1x128xf32> to vector<1x128xf32>
    %cst_29 = arith.constant dense<0.000000e+00> : vector<16xf32>
    %65 = vector.multi_reduction <add>, %60, %cst_29 [1] : vector<16x128xf32> to vector<16xf32>
    %66 = vector.shape_cast %65 : vector<16xf32> to vector<16x1xf32>
    %cst_30 = arith.constant 1.280000e+02 : f32
    %67 = vector.broadcast %cst_30 : f32 to vector<16x1xf32>
    %68 = arith.divf %66, %67 : vector<16x1xf32>
    %69 = vector.broadcast %68 : vector<16x1xf32> to vector<16x128xf32>
    %70 = arith.subf %60, %69 : vector<16x128xf32>
    %71 = arith.mulf %70, %70 : vector<16x128xf32>
    %cst_31 = arith.constant dense<0.000000e+00> : vector<16xf32>
    %72 = vector.multi_reduction <add>, %71, %cst_31 [1] : vector<16x128xf32> to vector<16xf32>
    %73 = vector.shape_cast %72 : vector<16xf32> to vector<16x1xf32>
    %cst_32 = arith.constant 1.280000e+02 : f32
    %74 = vector.broadcast %cst_32 : f32 to vector<16x1xf32>
    %75 = arith.divf %73, %74 : vector<16x1xf32>
    %76 = vector.broadcast %68 : vector<16x1xf32> to vector<16x128xf32>
    %77 = arith.subf %60, %76 : vector<16x128xf32>
    %cst_33 = arith.constant 9.99999996E-13 : f32
    %78 = vector.broadcast %cst_33 : f32 to vector<16x1xf32>
    %79 = arith.addf %75, %78 : vector<16x1xf32>
    %80 = math.rsqrt %79 : vector<16x1xf32>
    %81 = vector.broadcast %80 : vector<16x1xf32> to vector<16x128xf32>
    %82 = arith.mulf %77, %81 : vector<16x128xf32>
    %83 = vector.broadcast %62 : vector<1x128xf32> to vector<16x128xf32>
    %84 = arith.mulf %82, %83 : vector<16x128xf32>
    %85 = vector.broadcast %64 : vector<1x128xf32> to vector<16x128xf32>
    %86 = arith.addf %84, %85 : vector<16x128xf32>
    %87 = arith.truncf %86 : vector<16x128xf32> to vector<16x128xbf16>
    %c0_34 = arith.constant 0 : index
    %c0_35 = arith.constant 0 : index
    %c0_36 = arith.constant 0 : index
    %88 = vector.load %arg14[%c0_34, %c0_35, %c0_36] : memref<1x128x256xbf16, #tpu.memory_space<vmem>>, vector<1x128x256xbf16>
    %89 = vector.shape_cast %88 : vector<1x128x256xbf16> to vector<128x256xbf16>
    %cst_37 = arith.constant dense<0.000000e+00> : vector<16x256xf32>
    %90 = tpu.matmul %87, %89, %cst_37 {dimension_numbers = #tpu.dot_dimension_numbers<[1], [0], [0], [1], [0, 0, 1, 1], [], []>} : vector<16x128xbf16>, vector<128x256xbf16>, vector<16x256xf32> -> vector<16x256xf32>
    %c0_38 = arith.constant 0 : index
    %c0_39 = arith.constant 0 : index
    %c0_40 = arith.constant 0 : index
    %91 = vector.load %arg15[%c0_38, %c0_39, %c0_40] : memref<1x1x256xf32, #tpu.memory_space<vmem>>, vector<1x1x256xf32>
    %92 = vector.shape_cast %91 : vector<1x1x256xf32> to vector<1x256xf32>
    %93 = vector.broadcast %92 : vector<1x256xf32> to vector<16x256xf32>
    %94 = arith.addf %90, %93 : vector<16x256xf32>
    %cst_41 = arith.constant 5.000000e-01 : f32
    %95 = vector.broadcast %cst_41 : f32 to vector<16x256xf32>
    %96 = arith.mulf %95, %94 : vector<16x256xf32>
    %cst_42 = arith.constant 4.471500e-02 : f32
    %97 = vector.broadcast %cst_42 : f32 to vector<16x256xf32>
    %98 = arith.mulf %97, %94 : vector<16x256xf32>
    %99 = arith.mulf %98, %94 : vector<16x256xf32>
    %100 = arith.mulf %99, %94 : vector<16x256xf32>
    %101 = arith.addf %94, %100 : vector<16x256xf32>
    %cst_43 = arith.constant 0.797884583 : f32
    %102 = vector.broadcast %cst_43 : f32 to vector<16x256xf32>
    %103 = arith.mulf %102, %101 : vector<16x256xf32>
    %104 = math.tanh %103 : vector<16x256xf32>
    %cst_44 = arith.constant 1.000000e+00 : f32
    %105 = vector.broadcast %cst_44 : f32 to vector<16x256xf32>
    %106 = arith.addf %105, %104 : vector<16x256xf32>
    %107 = arith.mulf %96, %106 : vector<16x256xf32>
    %108 = arith.truncf %107 : vector<16x256xf32> to vector<16x256xbf16>
    %c0_45 = arith.constant 0 : index
    %c0_46 = arith.constant 0 : index
    %c0_47 = arith.constant 0 : index
    %109 = vector.load %arg16[%c0_45, %c0_46, %c0_47] : memref<1x256x128xbf16, #tpu.memory_space<vmem>>, vector<1x256x128xbf16>
    %110 = vector.shape_cast %109 : vector<1x256x128xbf16> to vector<256x128xbf16>
    %cst_48 = arith.constant dense<0.000000e+00> : vector<16x128xf32>
    %111 = tpu.matmul %108, %110, %cst_48 {dimension_numbers = #tpu.dot_dimension_numbers<[1], [0], [0], [1], [0, 0, 1, 1], [], []>} : vector<16x256xbf16>, vector<256x128xbf16>, vector<16x128xf32> -> vector<16x128xf32>
    %c0_49 = arith.constant 0 : index
    %c0_50 = arith.constant 0 : index
    %c0_51 = arith.constant 0 : index
    %112 = vector.load %arg17[%c0_49, %c0_50, %c0_51] : memref<1x1x128xf32, #tpu.memory_space<vmem>>, vector<1x1x128xf32>
    %113 = vector.shape_cast %112 : vector<1x1x128xf32> to vector<1x128xf32>
    %114 = vector.broadcast %113 : vector<1x128xf32> to vector<16x128xf32>
    %115 = arith.addf %111, %114 : vector<16x128xf32>
    %116 = arith.addf %86, %115 : vector<16x128xf32>
    %c0_52 = arith.constant 0 : index
    %c0_53 = arith.constant 0 : index
    %c0_54 = arith.constant 0 : index
    %117 = vector.load %arg18[%c0_52, %c0_53, %c0_54] : memref<1x1x128xf32, #tpu.memory_space<vmem>>, vector<1x1x128xf32>
    %118 = vector.shape_cast %117 : vector<1x1x128xf32> to vector<1x128xf32>
    %c0_55 = arith.constant 0 : index
    %c0_56 = arith.constant 0 : index
    %c0_57 = arith.constant 0 : index
    %119 = vector.load %arg19[%c0_55, %c0_56, %c0_57] : memref<1x1x128xf32, #tpu.memory_space<vmem>>, vector<1x1x128xf32>
    %120 = vector.shape_cast %119 : vector<1x1x128xf32> to vector<1x128xf32>
    %cst_58 = arith.constant dense<0.000000e+00> : vector<16xf32>
    %121 = vector.multi_reduction <add>, %116, %cst_58 [1] : vector<16x128xf32> to vector<16xf32>
    %122 = vector.shape_cast %121 : vector<16xf32> to vector<16x1xf32>
    %cst_59 = arith.constant 1.280000e+02 : f32
    %123 = vector.broadcast %cst_59 : f32 to vector<16x1xf32>
    %124 = arith.divf %122, %123 : vector<16x1xf32>
    %125 = vector.broadcast %124 : vector<16x1xf32> to vector<16x128xf32>
    %126 = arith.subf %116, %125 : vector<16x128xf32>
    %127 = arith.mulf %126, %126 : vector<16x128xf32>
    %cst_60 = arith.constant dense<0.000000e+00> : vector<16xf32>
    %128 = vector.multi_reduction <add>, %127, %cst_60 [1] : vector<16x128xf32> to vector<16xf32>
    %129 = vector.shape_cast %128 : vector<16xf32> to vector<16x1xf32>
    %cst_61 = arith.constant 1.280000e+02 : f32
    %130 = vector.broadcast %cst_61 : f32 to vector<16x1xf32>
    %131 = arith.divf %129, %130 : vector<16x1xf32>
    %132 = vector.broadcast %124 : vector<16x1xf32> to vector<16x128xf32>
    %133 = arith.subf %116, %132 : vector<16x128xf32>
    %cst_62 = arith.constant 9.99999996E-13 : f32
    %134 = vector.broadcast %cst_62 : f32 to vector<16x1xf32>
    %135 = arith.addf %131, %134 : vector<16x1xf32>
    %136 = math.rsqrt %135 : vector<16x1xf32>
    %137 = vector.broadcast %136 : vector<16x1xf32> to vector<16x128xf32>
    %138 = arith.mulf %133, %137 : vector<16x128xf32>
    %139 = vector.broadcast %118 : vector<1x128xf32> to vector<16x128xf32>
    %140 = arith.mulf %138, %139 : vector<16x128xf32>
    %141 = vector.broadcast %120 : vector<1x128xf32> to vector<16x128xf32>
    %142 = arith.addf %140, %141 : vector<16x128xf32>
    %c1_i32 = arith.constant 1 : i32
    %143 = arith.addi %arg1, %c1_i32 : i32
    %c2_i32 = arith.constant 2 : i32
    %144 = arith.cmpi slt, %143, %c2_i32 : i32
    %145 = arith.extui %144 : i1 to i32
    %c0_i32_63 = arith.constant 0 : i32
    %146 = arith.cmpi ne, %145, %c0_i32_63 : i32
    scf.if %146 {
      %c0_66 = arith.constant 0 : index
      %c0_67 = arith.constant 0 : index
      %152 = vector.load %arg21[%c0_66, %c0_67] : memref<16x128xf32, #tpu.memory_space<vmem>>, vector<16x128xf32>
      tpu.vector_store %arg21[%c0_66, %c0_67], %142 {strides = array<i32>} : memref<16x128xf32, #tpu.memory_space<vmem>>, vector<16x128xf32>,
    } else {
    }
    %147 = arith.index_cast %arg1 : i32 to index
    %148 = memref.load %arg3[%147] : memref<2xi32, #tpu.memory_space<smem>>
    %c1_i32_64 = arith.constant 1 : i32
    %149 = arith.cmpi eq, %148, %c1_i32_64 : i32
    %150 = arith.extui %149 : i1 to i32
    %c0_i32_65 = arith.constant 0 : i32
    %151 = arith.cmpi ne, %150, %c0_i32_65 : i32
    scf.if %151 {
      %c0_66 = arith.constant 0 : index
      %c0_67 = arith.constant 0 : index
      %c0_68 = arith.constant 0 : index
      %152 = vector.load %arg20[%c0_66, %c0_67, %c0_68] : memref<1x16x128xf32, #tpu.memory_space<vmem>>, vector<1x16x128xf32>
      %153 = vector.shape_cast %152 : vector<1x16x128xf32> to vector<16x128xf32>
      %154 = vector.shape_cast %142 : vector<16x128xf32> to vector<1x16x128xf32>
      tpu.vector_store %arg20[%c0_66, %c0_67, %c0_68], %154 {strides = array<i32>} : memref<1x16x128xf32, #tpu.memory_space<vmem>>, vector<1x16x128xf32>,
    } else {
    }
    return
  }
  func.func @transform_0(%arg0: i32, %arg1: i32, %arg2: memref<2xi32, #tpu.memory_space<smem>>, %arg3: memref<2xi32, #tpu.memory_space<smem>>) -> (i32, i32) {
    %c0_i32 = arith.constant 0 : i32
    %c0_i32_0 = arith.constant 0 : i32
    return %arg0, %c0_i32 : i32, i32
  }
  func.func @transform_1(%arg0: i32, %arg1: i32, %arg2: memref<2xi32, #tpu.memory_space<smem>>, %arg3: memref<2xi32, #tpu.memory_space<smem>>) -> (i32, i32, i32) {
    %c0_i32 = arith.constant 0 : i32
    %c0_i32_0 = arith.constant 0 : i32
    %c0_i32_1 = arith.constant 0 : i32
    return %arg0, %c0_i32, %c0_i32_0 : i32, i32, i32
  }
  func.func @transform_2(%arg0: i32, %arg1: i32, %arg2: memref<2xi32, #tpu.memory_space<smem>>, %arg3: memref<2xi32, #tpu.memory_space<smem>>) -> (i32, i32) {
    %c0_i32 = arith.constant 0 : i32
    %c0_i32_0 = arith.constant 0 : i32
    %c0_i32_1 = arith.constant 0 : i32
    return %c0_i32, %c0_i32_0 : i32, i32
  }
  func.func @transform_3(%arg0: i32, %arg1: i32, %arg2: memref<2xi32, #tpu.memory_space<smem>>, %arg3: memref<2xi32, #tpu.memory_space<smem>>) -> (i32, i32) {
    %c0_i32 = arith.constant 0 : i32
    %c0_i32_0 = arith.constant 0 : i32
    %c0_i32_1 = arith.constant 0 : i32
    return %c0_i32, %c0_i32_0 : i32, i32
  }
  func.func @transform_4(%arg0: i32, %arg1: i32, %arg2: memref<2xi32, #tpu.memory_space<smem>>, %arg3: memref<2xi32, #tpu.memory_space<smem>>) -> (i32, i32, i32) {
    %c0_i32 = arith.constant 0 : i32
    %c0_i32_0 = arith.constant 0 : i32
    %c0_i32_1 = arith.constant 0 : i32
    return %arg1, %c0_i32, %c0_i32_0 : i32, i32, i32
  }
  func.func @transform_5(%arg0: i32, %arg1: i32, %arg2: memref<2xi32, #tpu.memory_space<smem>>, %arg3: memref<2xi32, #tpu.memory_space<smem>>) -> (i32, i32, i32) {
    %c0_i32 = arith.constant 0 : i32
    %c0_i32_0 = arith.constant 0 : i32
    %c0_i32_1 = arith.constant 0 : i32
    return %arg1, %c0_i32, %c0_i32_0 : i32, i32, i32
  }
  func.func @transform_6(%arg0: i32, %arg1: i32, %arg2: memref<2xi32, #tpu.memory_space<smem>>, %arg3: memref<2xi32, #tpu.memory_space<smem>>) -> (i32, i32, i32) {
    %c0_i32 = arith.constant 0 : i32
    %c0_i32_0 = arith.constant 0 : i32
    %c0_i32_1 = arith.constant 0 : i32
    return %arg1, %c0_i32, %c0_i32_0 : i32, i32, i32
  }
  func.func @transform_7(%arg0: i32, %arg1: i32, %arg2: memref<2xi32, #tpu.memory_space<smem>>, %arg3: memref<2xi32, #tpu.memory_space<smem>>) -> (i32, i32, i32) {
    %c0_i32 = arith.constant 0 : i32
    %c0_i32_0 = arith.constant 0 : i32
    %c0_i32_1 = arith.constant 0 : i32
    return %arg1, %c0_i32, %c0_i32_0 : i32, i32, i32
  }
  func.func @transform_8(%arg0: i32, %arg1: i32, %arg2: memref<2xi32, #tpu.memory_space<smem>>, %arg3: memref<2xi32, #tpu.memory_space<smem>>) -> (i32, i32, i32) {
    %c0_i32 = arith.constant 0 : i32
    %c0_i32_0 = arith.constant 0 : i32
    %c0_i32_1 = arith.constant 0 : i32
    return %arg1, %c0_i32, %c0_i32_0 : i32, i32, i32
  }
  func.func @transform_9(%arg0: i32, %arg1: i32, %arg2: memref<2xi32, #tpu.memory_space<smem>>, %arg3: memref<2xi32, #tpu.memory_space<smem>>) -> (i32, i32, i32) {
    %c0_i32 = arith.constant 0 : i32
    %c0_i32_0 = arith.constant 0 : i32
    %c0_i32_1 = arith.constant 0 : i32
    return %arg1, %c0_i32, %c0_i32_0 : i32, i32, i32
  }
  func.func @transform_10(%arg0: i32, %arg1: i32, %arg2: memref<2xi32, #tpu.memory_space<smem>>, %arg3: memref<2xi32, #tpu.memory_space<smem>>) -> (i32, i32, i32) {
    %c0_i32 = arith.constant 0 : i32
    %c0_i32_0 = arith.constant 0 : i32
    %c0_i32_1 = arith.constant 0 : i32
    return %arg1, %c0_i32, %c0_i32_0 : i32, i32, i32
  }
  func.func @transform_11(%arg0: i32, %arg1: i32, %arg2: memref<2xi32, #tpu.memory_space<smem>>, %arg3: memref<2xi32, #tpu.memory_space<smem>>) -> (i32, i32, i32) {
    %c0_i32 = arith.constant 0 : i32
    %c0_i32_0 = arith.constant 0 : i32
    %c0_i32_1 = arith.constant 0 : i32
    return %arg1, %c0_i32, %c0_i32_0 : i32, i32, i32
  }
  func.func @transform_12(%arg0: i32, %arg1: i32, %arg2: memref<2xi32, #tpu.memory_space<smem>>, %arg3: memref<2xi32, #tpu.memory_space<smem>>) -> (i32, i32, i32) {
    %c0_i32 = arith.constant 0 : i32
    %c0_i32_0 = arith.constant 0 : i32
    %c0_i32_1 = arith.constant 0 : i32
    return %arg1, %c0_i32, %c0_i32_0 : i32, i32, i32
  }
  func.func @transform_13(%arg0: i32, %arg1: i32, %arg2: memref<2xi32, #tpu.memory_space<smem>>, %arg3: memref<2xi32, #tpu.memory_space<smem>>) -> (i32, i32, i32) {
    %c0_i32 = arith.constant 0 : i32
    %c0_i32_0 = arith.constant 0 : i32
    %c0_i32_1 = arith.constant 0 : i32
    return %arg1, %c0_i32, %c0_i32_0 : i32, i32, i32
  }
  func.func @transform_14(%arg0: i32, %arg1: i32, %arg2: memref<2xi32, #tpu.memory_space<smem>>, %arg3: memref<2xi32, #tpu.memory_space<smem>>) -> (i32, i32, i32) {
    %c0_i32 = arith.constant 0 : i32
    %c0_i32_0 = arith.constant 0 : i32
    %c0_i32_1 = arith.constant 0 : i32
    return %arg1, %c0_i32, %c0_i32_0 : i32, i32, i32
  }
  func.func @transform_15(%arg0: i32, %arg1: i32, %arg2: memref<2xi32, #tpu.memory_space<smem>>, %arg3: memref<2xi32, #tpu.memory_space<smem>>) -> (i32, i32, i32) {
    %c0_i32 = arith.constant 0 : i32
    %c0_i32_0 = arith.constant 0 : i32
    %c0_i32_1 = arith.constant 0 : i32
    return %arg1, %c0_i32, %c0_i32_0 : i32, i32, i32
  }
  func.func @transform_16(%arg0: i32, %arg1: i32, %arg2: memref<2xi32, #tpu.memory_space<smem>>, %arg3: memref<2xi32, #tpu.memory_space<smem>>) -> (i32, i32, i32) {
    %0 = arith.index_cast %arg1 : i32 to index
    %1 = memref.load %arg2[%0] : memref<2xi32, #tpu.memory_space<smem>>
    %c0_i32 = arith.constant 0 : i32
    %c0_i32_0 = arith.constant 0 : i32
    return %1, %arg0, %c0_i32 : i32, i32, i32
  }
}

</mosaic_0001>

<bundles_post_ra>
// kernel: tpu_custom_call.1
= control target key start
LH: loop header
LB: loop body
LE: loop exit
PB: predicated region body
PF: predicated region fallthrough
CT: control target
= control target key end

     0   :  { %s6332_s0 = inlined_call_operand.hbm [shape: s32[2], index: 0, kind: input, shape index: {}]   ;;  %s6333_s2 = inlined_call_operand.hbm [shape: f32[16,128], index: 2, kind: input, shape index: {}]   ;;  %s6334_s3 = inlined_call_operand.hbm [shape: f32[2,1,8], index: 3, kind: input, shape index: {}]   ;;  %s6335_s4 = inlined_call_operand.hbm [shape: f32[1,128], index: 4, kind: input, shape index: {}]   ;;  %s6336_s5 = inlined_call_operand.hbm [shape: f32[1,128], index: 5, kind: input, shape index: {}]   ;;  %s6337_s6 = inlined_call_operand.hbm [shape: bf16[2,128,384], index: 6, kind: input, shape index: {}]   ;;  %s6338_s7 = inlined_call_operand.vmem [shape: f32[2,1,384], index: 7, kind: input, shape index: {}]   ;;  %s6339_s8 = inlined_call_operand.hbm [shape: bf16[2,128,128], index: 8, kind: input, shape index: {}]   ;;  %s6340_s9 = inlined_call_operand.vmem [shape: f32[2,1,128], index: 9, kind: input, shape index: {}]   ;;  %s6341_s10 = inlined_call_operand.vmem [shape: f32[2,1,128], index: 10, kind: input, shape index: {}]   ;;  %s6342_s11 = inlined_call_operand.vmem [shape: f32[2,1,128], index: 11, kind: input, shape index: {}]   ;;  %s6343_s12 = inlined_call_operand.hbm [shape: bf16[2,128,256], index: 12, kind: input, shape index: {}]   ;;  %s6344_s13 = inlined_call_operand.vmem [shape: f32[2,1,256], index: 13, kind: input, shape index: {}]   ;;  %s6345_s14 = inlined_call_operand.hbm [shape: bf16[2,256,128], index: 14, kind: input, shape index: {}]   ;;  %s6346_s15 = inlined_call_operand.vmem [shape: f32[2,1,128], index: 15, kind: input, shape index: {}]   ;;  %s6347_s16 = inlined_call_operand.vmem [shape: f32[2,1,128], index: 16, kind: input, shape index: {}]   ;;  %s6348_s17 = inlined_call_operand.vmem [shape: f32[2,1,128], index: 17, kind: input, shape index: {}]   ;;  %s6349_s18 = inlined_call_operand.hbm [shape: f32[2,16,128], index: 18, kind: output, shape index: {}]   ;;  %s6350_s1 = inlined_call_operand.hbm [shape: s32[2], index: 1, kind: input, shape index: {}]  }
   0x1   :  { %6386 = sst [smem:[#allocation36_spill]] %s6332_s0 }
   0x2   :  { %6387 = sst [smem:[#allocation37_spill]] %s6333_s2  ;;  %s6404_s29 = sld [smem:[#allocation36_spill]] }
   0x3   :  { %6388 = sst [smem:[#allocation38_spill]] %s6334_s3 }
   0x4   :  { %6389 = sst [smem:[#allocation39_spill]] %s6335_s4 }
   0x5   :  { %6390 = sst [smem:[#allocation40_spill]] %s6336_s5 }
   0x6   :  { %6391 = sst [smem:[#allocation41_spill]] %s6337_s6 }
   0x7   :  { %6392 = sst [smem:[#allocation42_spill]] %s6338_s7 }
   0x8   :  { %6393 = sst [smem:[#allocation43_spill]] %s6339_s8 }
   0x9   :  { %6394 = sst [smem:[#allocation44_spill]] %s6340_s9 }
   0xa   :  { %6395 = sst [smem:[#allocation45_spill]] %s6341_s10 }
   0xb   :  { %6396 = sst [smem:[#allocation46_spill]] %s6342_s11 }
   0xc   :  { %6397 = sst [smem:[#allocation47_spill]] %s6343_s12 }
   0xd   :  { %6398 = sst [smem:[#allocation48_spill]] %s6344_s13  ;;  %s4778_s13 = scalar_lea.hbm %s6404_s29, 16 }
   0xe   :  { %6399 = sst [smem:[#allocation49_spill]] %s6345_s14  ;;  %p4779_p0 = scmp.ne.s32.totalorder %s6404_s29, %s4778_s13 }
   0xf   :  { %6400 = sst [smem:[#allocation50_spill]] %s6346_s15  ;;  %p4782_p1 = scmp.lt.u32.totalorder %s4778_s13, %s6404_s29 }
  0x10   :  { %6401 = sst [smem:[#allocation51_spill]] %s6347_s16 }
  0x11   :  { %6402 = sst [smem:[#allocation52_spill]] %s6348_s17  ;;  %p4784_p2 = pnand %p4782_p1, %p4779_p0 }
  0x12   :  { %6403 = sst [smem:[#allocation53_spill]] %s6349_s18 }
  0x13   :  { %4787 = shalt.err (!%p4784_p2)  }
  0x14   :  { %s5152_s20 = smov [#allocation4]   ;;  %s4788_s24 = scalar_lea.hbm %s6350_s1, 16 }
  0x15   :  { %24 = dma.hbm_to_smem %s6404_s29, 16, %s5152_s20, [#allocation3] }
  0x16   :  { %p4789_p3 = scmp.ne.s32.totalorder %s6350_s1, %s4788_s24  ;;  %p4792_p4 = scmp.lt.u32.totalorder %s4788_s24, %s6350_s1 }
  0x18   :  { %p4794_p5 = pnand %p4792_p4, %p4789_p3 }
  0x1a   :  { %4797 = shalt.err (!%p4794_p5)  }
  0x1b   :  { %s5153_s13 = smov [#allocation5]  }
  0x1c   :  { %26 = dma.hbm_to_smem %s6350_s1, 16, %s5153_s13, [#allocation3] }
  0x1d   :  { %5094 = dma.done.wait [#allocation3], 32 }
  0x1e   :  { %5095 = vsyncadd [#allocation3], 4294967264 }
  0x1f   :  { %28 = sfence }
  0x20   :  { %29 = vsyncpa [#allocation7], 0 }
  0x21   :  { %30 = vsyncpa [#allocation10], 0 }
  0x22   :  { %31 = vsyncpa [#allocation13], 0 }
  0x23   :  { %32 = vsyncpa [#allocation8], 0 }
  0x24   :  { %34 = vsyncpa [#allocation8 + $0x1], 0  ;;  %s5300_s29 = smov 0   ;;  %s5302_s19 = smov 0  }
  0x25   :  { %s5304_s2 = smov 0   ;;  %s5306_s20 = smov 0  }
  0x26   :  { %s5308_s21 = smov 0   ;;  %s5310_s22 = smov 0  }
  0x27   :  { %s5312_s1 = smov 0   ;;  %s5314_s3 = smov 0  }
  0x28   :  { %s5316_s23 = smov 0  }
  0x29 LB: > { %6405 = sst [smem:[#allocation26_spill]] %s5118_s29  ;;  %s5344_s24 = sadd.s32 4294967295, %s5150_s23   ;;  %s5150_s23 = sphi %s5316_s23, %s40_s23   ;;  %s5146_s3 = sphi %s5314_s3, %s6494_s3   ;;  %s5142_s1 = sphi %s5312_s1, %s6493_s1   ;;  %s5138_s22 = sphi %s5310_s22, %s6487_s22   ;;  %s5134_s21 = sphi %s5308_s21, %s6492_s21   ;;  %s5130_s20 = sphi %s5306_s20, %s6491_s20   ;;  %s5126_s2 = sphi %s5304_s2, %s6490_s2   ;;  %s5122_s19 = sphi %s5302_s19, %s6489_s19   ;;  %s5118_s29 = sphi %s5300_s29, %s6484_s29  }
  0x2a   : > { %6406 = sst [smem:[#allocation27_spill]] %s5122_s19  ;;  %s4108_s25 = sadd.s32 4294967294, %s5150_s23  }
  0x2b   : > { %6407 = sst [smem:[#allocation28_spill]] %s5138_s22  ;;  %p166_p6 = scmp.ne.s32.totalorder %s5134_s21, %s5130_s20 }
  0x2c   : > { %6408 = sst [smem:[#allocation29_spill]] %s5142_s1  ;;  %p6359_p7 = scmp.eq.s32.totalorder %s5344_s24, 0 }
  0x2d   : > { %6409 = sst [smem:[#allocation30_spill]] %s5150_s23  ;;  %p479_p8 = scmp.ne.s32.totalorder %s5126_s2, %s5122_s19 }
  0x2e   : > { %p5354_p9 = por %p6359_p7, %p166_p6  ;;  %p480_p10 = scmp.eq.s32.totalorder %s5344_s24, 1 }
  0x2f   : > { %p485_p11 = scmp.ne.s32.totalorder %s5122_s19, %s5118_s29  ;;  %p486_p12 = scmp.eq.s32.totalorder %s4108_s25, 1 }
  0x30   : > { %s6410_s27 = scalar_select %p5354_p9, 1, 0 }
  0x31   : > { %p5361_p13 = por %p480_p10, %p479_p8  ;;  %p4109_p0 = scmp.ge.s32.totalorder %s5150_s23, 1 }
  0x32   : > { %p5366_p1 = por %p486_p12, %p485_p11  ;;  %p493_p2 = scmp.lt.s32.totalorder %s5150_s23, 3 }
  0x33   : > { %s6411_s28 = scalar_select %p5361_p13, 1, 0 }
  0x34   : > { %s6413_s13 = scalar_select %p5366_p1, 1, 0 }
  0x35   : > { %6412 = sst [smem:[#allocation31_spill]] %s6411_s28  ;;  %p5371_p3 = pnand %p4109_p0, %p493_p2 }
  0x36   : > { %6414 = sst [smem:[#allocation32_spill]] %s6413_s13  ;;  %s5154_s0 = smov [#allocation6]  }
  0x37   : > { %s6415_s30 = scalar_select %p5371_p3, 1, 0 }
  0x38   : > { %s508_s20 = sshll.u32 %s5154_s0, 4  ;;  %p4493_p4 = pneg %p5371_p3  ;;  %s509_s20 = int_to_ptr.vmem [resolvable:$true] %s508_s20 }
  0x39   : > { %s49_s26 = sadd.s32 1, %s5146_s3  ;;  %s6417_s18 = sld [smem:[#allocation37_spill]] }
  0x3a   : > { %p5380_p6 = pnand %p4493_p4, %p6359_p7 }
  0x3c   : > { %s6416_s25 = scalar_select %p5380_p6, 1, 0 }
  0x3d   : > { %p5393_p10 = pneg %p5380_p6 }
  0x3f   : > { %s4798_s28 = scalar_lea.hbm %s6417_s18, 256 }
  0x40   : > { %p4799_p8 = scmp.ne.s32.totalorder %s6417_s18, %s4798_s28  ;;  %p4805_p0 = scmp.lt.u32.totalorder %s4798_s28, %s6417_s18 }
  0x41   : > { %s6418_s0 = scalar_select %p5393_p10, 1, 0 }
  0x42   : > { %p4801_p11 = pnand %p5393_p10, %p4799_p8 }
  0x44   : > { %p4802_p12 = pneg %p4801_p11 }
  0x46   : > { %p4807_p2 = pnand %p4805_p0, %p4802_p12 }
  0x48   : > { %4810 = shalt.err (!%p4807_p2)
}
  0x49   : > { %s4811_s29 = scalar_lea.vmem %s509_s20, 256  ;;  %p4819_p1 = scmp.lt.s32.totalorder %s509_s20, %s509_s20 }
  0x4a   : > { %p4812_p4 = scmp.ne.s32.totalorder %s509_s20, %s4811_s29  ;;  %p4820_p13 = scmp.lt.s32.totalorder %s4811_s29, %s4811_s29 }
  0x4c   : > { %p4814_p5 = pnand %p4812_p4, %p5393_p10  ;;  %p4821_p9 = por %p4820_p13, %p4819_p1 }
  0x4e   : > { %p4815_p7 = pneg %p4814_p5 }
  0x50   : > { %p4822_p3 = pnand %p4821_p9, %p4815_p7 }
  0x52   : > { %4825 = shalt.err (!%p4822_p3)
}
  0x53   : > { %s6363_s16 = smov 128   ;;  %s6364_s7 = smov 8  }
  0x54   : > { %4496 = dma.hbm_to_vmem [thread:$0]  (!%p5380_p6), %s6417_s18, 256, %s509_s20, [#allocation7], %s6363_s16, %s6363_s16, %s6364_s7  }
  0x55   : > { %p50_p7 = scmp.ge.s32.totalorder %s49_s26, 2  ;;  %s153_s28 = sadd.s32 1, %s5138_s22 }
  0x56   : > { %p160_p9 = scmp.ne.s32.totalorder %s5138_s22, %s5134_s21  ;;  %p161_p13 = scmp.eq.s32.totalorder %s5150_s23, 0 }
  0x57   : > { %s6496_s26 = smov (%p50_p7, %s49_s26), 0  ;;  %s462_s13 = sld [smem:[#allocation4 + %s5146_s3]] }
  0x58   : > { %6419 = sst [smem:[#allocation33_spill]] %s6496_s26  ;;  %p162_p1 = por %p161_p13, %p160_p9 }
  0x59   : > { %s150_s29 = ssub.s32 %s5146_s3, %s6496_s26  ;;  %s463_s11 = sld [smem:[#allocation4 + %s6496_s26]] }
  0x5a   : > { %p151_p3 = scmp.eq.s32.totalorder %s150_s29, 0  ;;  %p4527_p5 = scmp.lt.s32.totalorder %s5150_s23, 2 }
  0x5b   : > { %s560_s10 = sand.u32 1, %s5150_s23   ;;  %s5425_s15 = sand.u32 1, %s5138_s22  }
  0x5c   : > { %s5428_s20 = scalar_select %p151_p3, %s5138_s22, %s153_s28  }
  0x5d   : > { %s4461_s17 = smul.u32 192, %s5425_s15  ;;  %p5432_p8 = pnand %p4527_p5, %p162_p1 }
  0x5e   : > { %6420 = sst [smem:[#allocation34_spill]] %s5428_s20  ;;  %s4462_s16 = smul.u32 3072, %s5146_s3 }
  0x5f   : > { %s6421_s7 = scalar_select %p5432_p8, 1, 0 }
  0x60   : > { %s464_s18 = ssub.s32 %s462_s13, %s463_s11  ;;  %s6422_s6 = sld [smem:[#allocation41_spill]] }
  0x61   : > { %p467_p11 = scmp.eq.s32.totalorder %s464_s18, 0  ;;  %s564_s28 = scalar_lea.vmem [#allocation14], %s4461_s17 }
  0x62   : > { %s571_s20 = sshll.u32 %s564_s28, 4  ;;  %s6423_s22 = sadd.s32 1, %s5126_s2  ;;  %s5446_s20 = int_to_ptr.vmem [resolvable:$true] %s571_s20 }
  0x63   : > { %s5444_s23 = scalar_select %p467_p11, %s5126_s2, %s6423_s22  }
  0x64   : > { %s4116_s1 = sshll.u32 %s5425_s15, 6  ;;  %s5449_s19 = scalar_lea.sflag [#allocation7], %s560_s10 }
  0x65   : > { %6424 = sst [smem:[#allocation35_spill]] %s5444_s23  ;;  %p5455_p0 = pneg %p5432_p8 }
  0x66   : > { %s5439_s29 = scalar_lea.hbm %s6422_s6, %s4462_s16  ;;  %s4831_s22 = scalar_lea.hbm %s6422_s6, 6144 }
  0x67   : > { %s4826_s11 = scalar_lea.hbm %s5439_s29, 3072  ;;  %p4832_p7 = scmp.lt.u32.totalorder %s5439_s29, %s6422_s6 }
  0x68   : > { %p4827_p12 = scmp.ne.s32.totalorder %s5439_s29, %s4826_s11  ;;  %p4833_p9 = scmp.lt.u32.totalorder %s4831_s22, %s4826_s11 }
  0x69   : > { %s6425_s9 = scalar_select %p5455_p0, 1, 0 }
  0x6a   : > { %p4829_p2 = pnand %p5455_p0, %p4827_p12  ;;  %p4834_p13 = por %p4833_p9, %p4832_p7 }
  0x6b   : > { %p4835_p1 = scmp.lt.u32.totalorder %s4826_s11, %s5439_s29 }
  0x6c   : > { %p4830_p4 = pneg %p4829_p2 }
  0x6d   : > { %p4836_p3 = por %p4835_p1, %p4834_p13 }
  0x6f   : > { %p4837_p5 = pnand %p4836_p3, %p4830_p4 }
  0x71   : > { %4840 = shalt.err (!%p4837_p5)
}
  0x72   : > { %s4841_s10 = scalar_lea.vmem %s5446_s20, 3072  ;;  %s5157_s17 = smov [#allocation14]  }
  0x73   : > { %p4842_p11 = scmp.ne.s32.totalorder %s5446_s20, %s4841_s10  ;;  %s4846_s28 = sshll.u32 %s5157_s17, 4  ;;  %s4847_s28 = int_to_ptr.vmem [resolvable:$false] %s4846_s28 }
  0x74   : > { %s4848_s18 = scalar_lea.vmem %s4847_s28, 6144  ;;  %p4849_p6 = scmp.lt.s32.totalorder %s5446_s20, %s4847_s28 }
  0x75   : > { %p4844_p12 = pnand %p4842_p11, %p5455_p0  ;;  %p4850_p10 = scmp.lt.s32.totalorder %s4848_s18, %s4841_s10 }
  0x77   : > { %p4845_p2 = pneg %p4844_p12  ;;  %p4851_p7 = por %p4850_p10, %p4849_p6 }
  0x79   : > { %p4852_p9 = pnand %p4851_p7, %p4845_p2 }
  0x7b   : > { %4855 = shalt.err (!%p4852_p9)
}
  0x7c   : > { %s5158_s11 = smov 192   ;;  %s5159_s26 = smov 12  }
  0x7d   : > { %4509 = dma.hbm_to_vmem [thread:$0]  (!%p5432_p8), %s5439_s29, 3072, %s5446_s20, %s5449_s19, %s5158_s11, %s5158_s11, %s5159_s26  }
  0x7e   : > { %s4249_s22 = sshll.u32 %s5146_s3, 10  ;;  %s6426_s8 = sld [smem:[#allocation43_spill]] }
  0x7f   : > { %s592_s10 = scalar_lea.vmem [#allocation15], %s4116_s1 }
  0x80   : > { %s599_s28 = sshll.u32 %s592_s10, 4  ;;  %s5487_s28 = int_to_ptr.vmem [resolvable:$true] %s599_s28 }
  0x84   : > { %s5483_s17 = scalar_lea.hbm %s6426_s8, %s4249_s22  ;;  %s4861_s11 = scalar_lea.hbm %s6426_s8, 2048 }
  0x85   : > { %s4856_s18 = scalar_lea.hbm %s5483_s17, 1024  ;;  %p4862_p13 = scmp.lt.u32.totalorder %s5483_s17, %s6426_s8 }
  0x86   : > { %p4857_p6 = scmp.ne.s32.totalorder %s5483_s17, %s4856_s18  ;;  %p4863_p1 = scmp.lt.u32.totalorder %s4861_s11, %s4856_s18 }
  0x87   : > { %p4865_p5 = scmp.lt.u32.totalorder %s4856_s18, %s5483_s17 }
  0x88   : > { %p4859_p10 = pnand %p4857_p6, %p5455_p0  ;;  %p4864_p3 = por %p4863_p1, %p4862_p13 }
  0x8a   : > { %p4860_p4 = pneg %p4859_p10  ;;  %p4866_p11 = por %p4865_p5, %p4864_p3 }
  0x8c   : > { %p4867_p12 = pnand %p4866_p11, %p4860_p4 }
  0x8e   : > { %4870 = shalt.err (!%p4867_p12)
}
  0x8f   : > { %s4871_s1 = scalar_lea.vmem %s5487_s28, 1024  ;;  %s5160_s16 = smov [#allocation15]  }
  0x90   : > { %p4872_p2 = scmp.ne.s32.totalorder %s5487_s28, %s4871_s1  ;;  %s4876_s13 = sshll.u32 %s5160_s16, 4  ;;  %s4877_s13 = int_to_ptr.vmem [resolvable:$false] %s4876_s13 }
  0x91   : > { %s4878_s10 = scalar_lea.vmem %s4877_s13, 2048  ;;  %p4879_p6 = scmp.lt.s32.totalorder %s5487_s28, %s4877_s13 }
  0x92   : > { %p4874_p7 = pnand %p4872_p2, %p5455_p0  ;;  %p4880_p10 = scmp.lt.s32.totalorder %s4878_s10, %s4871_s1 }
  0x94   : > { %p4875_p9 = pneg %p4874_p7  ;;  %p4881_p13 = por %p4880_p10, %p4879_p6 }
  0x96   : > { %p4882_p1 = pnand %p4881_p13, %p4875_p9 }
  0x98   : > { %4885 = shalt.err (!%p4882_p1)
}
  0x99   : > { %s6379_s18 = smov 64   ;;  %s6380_s20 = smov 4  }
  0x9a   : > { %4512 = dma.hbm_to_vmem [thread:$0]  (!%p5432_p8), %s5483_s17, 1024, %s5487_s28, %s5449_s19, %s6379_s18, %s6379_s18, %s6380_s20  }
  0x9b   : > { %s5163_s29 = smov [#allocation9]   ;;  %s6427_s1 = sld [smem:[#allocation38_spill]] }
  0x9c   : > { %s524_s11 = sshll.u32 %s5163_s29, 4  ;;  %p6429_p3 = scmp.ne.s32.totalorder %s6418_s0, 0  ;;  %s525_s11 = int_to_ptr.vmem [resolvable:$true] %s524_s11 }
  0xa1   : > { %s6428_s16 = smov %s6427_s1  ;;  %s4886_s13 = scalar_lea.hbm %s6427_s1, 32 }
  0xa2   : > { %p4887_p4 = scmp.ne.s32.totalorder %s6428_s16, %s4886_s13  ;;  %p4893_p12 = scmp.lt.u32.totalorder %s4886_s13, %s6428_s16 }
  0xa4   : > { %p4889_p5 = pnand %p4887_p4, %p6429_p3 }
  0xa6   : > { %p4890_p11 = pneg %p4889_p5 }
  0xa8   : > { %p4895_p2 = pnand %p4893_p12, %p4890_p11 }
  0xaa   : > { %4898 = shalt.err (!%p4895_p2)
}
  0xab   : > { %s4899_s17 = scalar_lea.vmem %s525_s11, 32  ;;  %p4907_p10 = scmp.lt.s32.totalorder %s525_s11, %s525_s11 }
  0xac   : > { %p4900_p7 = scmp.ne.s32.totalorder %s525_s11, %s4899_s17  ;;  %p4908_p13 = scmp.lt.s32.totalorder %s4899_s17, %s4899_s17 }
  0xae   : > { %p4902_p9 = pnand %p4900_p7, %p6429_p3  ;;  %p4909_p1 = por %p4908_p13, %p4907_p10 }
  0xb0   : > { %p4903_p6 = pneg %p4902_p9 }
  0xb2   : > { %p4910_p8 = pnand %p4909_p1, %p4903_p6 }
  0xb4   : > { %4913 = shalt.err (!%p4910_p8)
}
  0xb5   : > { %s5164_s6 = smov 16   ;;  %s5165_s8 = smov 1  }
  0xb6   : > { %p6430_p4 = scmp.ne.s32.totalorder %s6416_s25, 0  ;;  %s6381_s29 = sshll.u32 %s5425_s15, 7 }
  0xb7   : > { %s4250_s26 = sshll.u32 %s5146_s3, 11  ;;  %s6431_s12 = sld [smem:[#allocation47_spill]] }
  0xb8   : > { %4499 = dma.hbm_to_vmem [thread:$0]  (!%p6430_p4), %s6428_s16, 32, %s525_s11, [#allocation10], %s5164_s6, %s5164_s6, %s5165_s8  }
  0xb9   : > { %s631_s10 = scalar_lea.vmem [#allocation16], %s6381_s29  ;;  %s5166_s18 = smov [#allocation11]  }
  0xba   : > { %s638_s17 = sshll.u32 %s631_s10, 4  ;;  %s5545_s23 = sshll.u32 %s5166_s18, 4  ;;  %s5543_s17 = int_to_ptr.vmem [resolvable:$true] %s638_s17  ;;  %s539_s23 = int_to_ptr.vmem [resolvable:$true] %s5545_s23 }
  0xbd   : > { %s5539_s13 = scalar_lea.hbm %s6431_s12, %s4250_s26  ;;  %s4919_s28 = scalar_lea.hbm %s6431_s12, 4096 }
  0xbe   : > { %s4914_s11 = scalar_lea.hbm %s5539_s13, 2048  ;;  %p4920_p12 = scmp.lt.u32.totalorder %s5539_s13, %s6431_s12 }
  0xbf   : > { %p4915_p8 = scmp.ne.s32.totalorder %s5539_s13, %s4914_s11  ;;  %p4921_p2 = scmp.lt.u32.totalorder %s4919_s28, %s4914_s11 }
  0xc0   : > { %p4923_p9 = scmp.lt.u32.totalorder %s4914_s11, %s5539_s13 }
  0xc1   : > { %p4917_p5 = pnand %p4915_p8, %p5455_p0  ;;  %p4922_p7 = por %p4921_p2, %p4920_p12 }
  0xc3   : > { %p4918_p11 = pneg %p4917_p5  ;;  %p4924_p6 = por %p4923_p9, %p4922_p7 }
  0xc5   : > { %p4925_p10 = pnand %p4924_p6, %p4918_p11 }
  0xc7   : > { %4928 = shalt.err (!%p4925_p10)
}
  0xc8   : > { %s4929_s18 = scalar_lea.vmem %s5543_s17, 2048  ;;  %s5167_s10 = smov [#allocation16]  }
  0xc9   : > { %p4930_p13 = scmp.ne.s32.totalorder %s5543_s17, %s4929_s18  ;;  %s4934_s6 = sshll.u32 %s5167_s10, 4  ;;  %s4935_s6 = int_to_ptr.vmem [resolvable:$false] %s4934_s6 }
  0xca   : > { %s4936_s8 = scalar_lea.vmem %s4935_s6, 4096  ;;  %p4937_p5 = scmp.lt.s32.totalorder %s5543_s17, %s4935_s6 }
  0xcb   : > { %p4932_p1 = pnand %p4930_p13, %p5455_p0  ;;  %p4938_p4 = scmp.lt.s32.totalorder %s4936_s8, %s4929_s18 }
  0xcd   : > { %p4933_p8 = pneg %p4932_p1  ;;  %p4939_p12 = por %p4938_p4, %p4937_p5 }
  0xcf   : > { %p4940_p2 = pnand %p4939_p12, %p4933_p8 }
  0xd1   : > { %4943 = shalt.err (!%p4940_p2)
}
  0xd2   : > { %p6432_p11 = scmp.ne.s32.totalorder %s6421_s7, 0  ;;  %s6433_s11 = smov 8  }
  0xd3   : > { %s6434_s28 = smov 128   ;;  %s6435_s4 = sld [smem:[#allocation39_spill]] }
  0xd4   : > { %4515 = dma.hbm_to_vmem [thread:$0]  (!%p6432_p11), %s5539_s13, 2048, %s5543_s17, %s5449_s19, %s6434_s28, %s6434_s28, %s6433_s11  }
  0xd9   : > { %s4944_s10 = scalar_lea.hbm %s6435_s4, 16 }
  0xda   : > { %p4945_p4 = scmp.ne.s32.totalorder %s6435_s4, %s4944_s10  ;;  %p4951_p6 = scmp.lt.u32.totalorder %s4944_s10, %s6435_s4 }
  0xdc   : > { %p4947_p7 = pnand %p4945_p4, %p6429_p3 }
  0xde   : > { %p4948_p9 = pneg %p4947_p7 }
  0xe0   : > { %p4953_p10 = pnand %p4951_p6, %p4948_p9 }
  0xe2   : > { %4956 = shalt.err (!%p4953_p10)
}
  0xe3   : > { %s4957_s29 = scalar_lea.vmem %s539_s23, 16  ;;  %s4964_s13 = scalar_lea.vmem %s539_s23, 32 }
  0xe4   : > { %p4958_p13 = scmp.ne.s32.totalorder %s539_s23, %s4957_s29  ;;  %p4965_p5 = scmp.lt.s32.totalorder %s539_s23, %s539_s23 }
  0xe5   : > { %p4966_p12 = scmp.lt.s32.totalorder %s4964_s13, %s4957_s29 }
  0xe6   : > { %p4960_p1 = pnand %p4958_p13, %p6429_p3 }
  0xe7   : > { %p4967_p2 = por %p4966_p12, %p4965_p5 }
  0xe8   : > { %p4961_p8 = pneg %p4960_p1 }
  0xea   : > { %p4968_p11 = pnand %p4967_p2, %p4961_p8 }
  0xec   : > { %4971 = shalt.err (!%p4968_p11)
}
  0xed   : > { %p6436_p4 = scmp.ne.s32.totalorder %s6416_s25, 0  ;;  %s5168_s20 = smov [#allocation12]  }
  0xee   : > { %s549_s28 = sshll.u32 %s5168_s20, 4  ;;  %s6437_s14 = sld [smem:[#allocation49_spill]]  ;;  %s550_s28 = int_to_ptr.vmem [resolvable:$true] %s549_s28 }
  0xef   : > { %4502 = dma.hbm_to_vmem [thread:$0]  (!%p6436_p4), %s6435_s4, 16, %s539_s23, [#allocation10]  }
  0xf0   : > { %s6438_s5 = sld [smem:[#allocation40_spill]] }
  0xf4   : > { %s5596_s10 = scalar_lea.hbm %s6437_s14, %s4250_s26 }
  0xf6   : > { %s4972_s6 = scalar_lea.hbm %s6438_s5, 16 }
  0xf7   : > { %p4973_p11 = scmp.ne.s32.totalorder %s6438_s5, %s4972_s6  ;;  %p4979_p6 = scmp.lt.u32.totalorder %s4972_s6, %s6438_s5 }
  0xf9   : > { %p4975_p7 = pnand %p4973_p11, %p6429_p3 }
  0xfb   : > { %p4976_p9 = pneg %p4975_p7 }
  0xfd   : > { %p4981_p10 = pnand %p4979_p6, %p4976_p9 }
  0xff   : > { %4984 = shalt.err (!%p4981_p10)
}
 0x100   : > { %s4985_s11 = scalar_lea.vmem %s550_s28, 16  ;;  %s4992_s26 = scalar_lea.vmem %s550_s28, 32 }
 0x101   : > { %p4986_p13 = scmp.ne.s32.totalorder %s550_s28, %s4985_s11  ;;  %p4993_p5 = scmp.lt.s32.totalorder %s550_s28, %s550_s28 }
 0x102   : > { %p4994_p12 = scmp.lt.s32.totalorder %s4992_s26, %s4985_s11 }
 0x103   : > { %p4988_p1 = pnand %p4986_p13, %p6429_p3 }
 0x104   : > { %p4995_p2 = por %p4994_p12, %p4993_p5 }
 0x105   : > { %p4989_p8 = pneg %p4988_p1 }
 0x107   : > { %p4996_p0 = pnand %p4995_p2, %p4989_p8 }
 0x109   : > { %4999 = shalt.err (!%p4996_p0)
}
 0x10a   : > { %4505 = dma.hbm_to_vmem [thread:$0]  (!%p6436_p4), %s6438_s5, 16, %s550_s28, [#allocation13]  }
 0x10b   : > { %s6439_s0 = sshll.u32 %s5425_s15, 7  ;;  %s5000_s18 = scalar_lea.hbm %s5596_s10, 2048 }
 0x10c   : > { %s659_s1 = scalar_lea.vmem [#allocation17], %s6439_s0  ;;  %p5001_p3 = scmp.ne.s32.totalorder %s5596_s10, %s5000_s18 }
 0x10d   : > { %s666_s29 = sshll.u32 %s659_s1, 4  ;;  %p6440_p0 = scmp.ne.s32.totalorder %s6425_s9, 0  ;;  %s5618_s29 = int_to_ptr.vmem [resolvable:$true] %s666_s29 }
 0x10e   : > { %s5005_s8 = scalar_lea.hbm %s6437_s14, 4096  ;;  %p5006_p9 = scmp.lt.u32.totalorder %s5596_s10, %s6437_s14 }
 0x10f   : > { %p5003_p11 = pnand %p5001_p3, %p6440_p0  ;;  %p5007_p6 = scmp.lt.u32.totalorder %s5005_s8, %s5000_s18 }
 0x110   : > { %p5009_p10 = scmp.lt.u32.totalorder %s5000_s18, %s5596_s10 }
 0x111   : > { %p5004_p7 = pneg %p5003_p11  ;;  %p5008_p4 = por %p5007_p6, %p5006_p9 }
 0x113   : > { %p5010_p13 = por %p5009_p10, %p5008_p4 }
 0x115   : > { %p5011_p1 = pnand %p5010_p13, %p5004_p7 }
 0x117   : > { %5014 = shalt.err (!%p5011_p1)
}
 0x118   : > { %s5015_s15 = scalar_lea.vmem %s5618_s29, 2048  ;;  %s5169_s28 = smov [#allocation17]  }
 0x119   : > { %p5016_p8 = scmp.ne.s32.totalorder %s5618_s29, %s5015_s15  ;;  %s5020_s17 = sshll.u32 %s5169_s28, 4  ;;  %s5021_s17 = int_to_ptr.vmem [resolvable:$false] %s5020_s17 }
 0x11a   : > { %s5022_s11 = scalar_lea.vmem %s5021_s17, 4096  ;;  %p5023_p2 = scmp.lt.s32.totalorder %s5618_s29, %s5021_s17 }
 0x11b   : > { %p5018_p5 = pnand %p5016_p8, %p6440_p0  ;;  %p5024_p3 = scmp.lt.s32.totalorder %s5022_s11, %s5015_s15 }
 0x11d   : > { %p5019_p12 = pneg %p5018_p5  ;;  %p5025_p11 = por %p5024_p3, %p5023_p2 }
 0x11f   : > { %p5026_p9 = pnand %p5025_p11, %p5019_p12 }
 0x121   : > { %5029 = shalt.err (!%p5026_p9)
}
 0x122   : > { %p6441_p7 = scmp.ne.s32.totalorder %s6421_s7, 0  ;;  %s6442_s26 = smov 4  }
 0x123   : > { %s6443_s20 = smov 64   ;;  %p6444_p0 = scmp.ne.s32.totalorder %s6415_s30, 0 }
 0x124   : > { %4518 = dma.hbm_to_vmem [thread:$0]  (!%p6441_p7), %s5596_s10, 2048, %s5618_s29, %s5449_s19, %s6443_s20, %s6443_s20, %s6442_s26  }
 0x125   : > { %696 = sbr.rel (%p6444_p0) target bundleno = 3418 (0xd5a), region = 84  ;;  %p6445_p6 = scmp.eq.s32.totalorder (!%p6444_p0), %s5344_s24, 0 }
 0x12c   : > { %5097 = dma.done.wait (%p6445_p6), [#allocation7], 256   ;;  %p6446_p4 = pmov %p6445_p6 }
 0x12e   : > { %5099 = vsyncadd (%p6446_p4), [#allocation7], 4294967040  ;;  %p6447_p10 = pmov %p6446_p4 }
 0x12f   : > { %p6448_p13 = pmov %p6446_p4 }
 0x130   : > { %5101 = dma.done.wait (%p6447_p10), [#allocation10], 48  }
 0x131   : > { %5103 = vsyncadd (%p6448_p13), [#allocation10], 4294967248  ;;  %p6449_p1 = pmov %p6446_p4 }
 0x133   : > { %5105 = dma.done.wait (%p6449_p1), [#allocation13], 16   ;;  %p6450_p8 = pmov %p6449_p1 }
 0x134   : > { %s714_s19 = sand.u32 1, %s5344_s24   ;;  %s716_s30 = sand.u32 1, %s5134_s21  }
 0x135   : > { %5107 = vsyncadd (%p6450_p8), [#allocation13], 4294967280  ;;  %s4463_s7 = smul.u32 192, %s716_s30  ;;  %s715_s9 = scalar_lea.sflag [#allocation7], %s714_s19 }
 0x136   : > { %p6451_p5 = scmp.ne.s32.totalorder %s6410_s27, 0 }
 0x137   : > { %s5661_s10 = scalar_lea.vmem [#allocation14], %s4463_s7 }
 0x138   : > { %5109 = dma.done.wait (%p6451_p5), %s715_s9, 8192  }
 0x139   : > { %5111 = vsyncadd (%p6451_p5), %s715_s9, 4294959104  ;;  %s6452_s22 = sld [smem:[#allocation27_spill]]  ;;  %s6453_s0 = sld [smem:[#allocation29_spill]] }
 0x13a   : > { %s4130_s1 = sshll.u32 %s716_s30, 6  ;;  %s4131_s29 = sshll.u32 %s716_s30, 7 }
 0x13b   : > { %s6454_s13 = sld [smem:[#allocation44_spill]]  ;;  %s6458_s14 = sld [smem:[#allocation48_spill]] }
 0x13c   : > { %s6460_s11 = sld [smem:[#allocation51_spill]]  ;;  %s6461_s30 = sld [smem:[#allocation52_spill]] }
 0x13d   : > { %s5712_s9 = scalar_lea.vmem [#allocation16], %s4131_s29 }
 0x13f   : > { %s6384_s18 = sand.u32 1, %s6452_s22   ;;  %p837_p12 = scmp.lt.s32.totalorder %s6453_s0, 1 }
 0x140   : > { %s4133_s25 = sshll.u32 %s6384_s18, 4  ;;  %s6457_s22 = sld [smem:[#allocation42_spill]] }
 0x141   : > { %s5672_s24 = scalar_select %p837_p12, %s6453_s0, 1 }
 0x142   : > { %p4135_p2 = scmp.ne.s32.totalorder %s6453_s0, 0 }
 0x143   : > { %s4464_s27 = smul.u32 3, %s5672_s24  ;;  %s843_s23 = scalar_lea.vmem %s6454_s13, %s5672_s24  ;;  %v870_v0 = vld [vmem:[#allocation6] sm:$0xff] (!%p4135_p2)  ;;  %v871_v1 = vld [vmem:[#allocation6 + $0x8] sm:$0xff] (!%p4135_p2)  ;;  %v4136_v17 = vld [vmem:[#allocation11] ss:$0 sm:$0xff] (!%p4135_p2) }
 0x144   : > { %s4134_s4 = sshll.u32 %s5672_s24, 1  ;;  %s6459_s13 = sld [smem:[#allocation50_spill]]  ;;  %874 = vadd.xlane.f32.xlu0 (!%p4135_p2), %v870_v0  ;;  %v4137_v19 = vld [vmem:[#allocation12] ss:$0 sm:$0xff] (!%p4135_p2) }
 0x145   : > { %s5696_s16 = scalar_lea.vmem %s6458_s14, %s4134_s4  ;;  %s859_s26 = scalar_lea.vmem %s6460_s11, %s5672_s24 }
 0x146   : > { %s5690_s18 = scalar_lea.vmem %s6457_s22, %s4464_s27  ;;  %s862_s7 = scalar_lea.vmem %s6461_s30, %s5672_s24 }
 0x147   : > { %s5710_s27 = scalar_lea.vmem [#allocation15], %s4130_s1  ;;  %s5714_s22 = scalar_lea.vmem [#allocation17], %s4131_s29 }
 0x148   : > { %s5716_s4 = scalar_lea.vmem [#allocation18], %s4133_s25  ;;  %869 = sbr.rel (%p4135_p2) target bundleno = 640 (0x280), region = 120  ;;  %876 = vadd.xlane.f32.xlu0 (!%p4135_p2), %v871_v1 }
 0x14a   : > { %s856_s15 = scalar_lea.vmem %s6459_s13, %s5672_s24 }
 0x1d1   : > { %v875_v2 = vpop.xlane.xlu0 %874 }
 0x1d2   : > { %v879_v3 = vmul.f32 0.0078125, %v875_v2 }
 0x1d4   : > { %v881_v4 = vsub.f32 %v870_v0, %v879_v3 }
 0x1d5   : > { %v877_v5 = vpop.xlane.xlu0 %876 }
 0x1d6   : > { %v880_v6 = vmul.f32 0.0078125, %v877_v5  ;;  %v883_v7 = vmul.f32 %v881_v4, %v881_v4 }
 0x1d8   : > { %v882_v8 = vsub.f32 %v871_v1, %v880_v6  ;;  %885 = vadd.xlane.f32.xlu1 %v883_v7 }
 0x1da   : > { %v884_v9 = vmul.f32 %v882_v8, %v882_v8 }
 0x1dc   : > { %887 = vadd.xlane.f32.xlu1 %v884_v9 }
 0x265   : > { %v886_v10 = vpop.xlane.xlu1 %885 }
 0x266   : > { %v889_v11 = vmul.f32 0.0078125, %v886_v10 }
 0x268   : > { %v891_v12 = vadd.f32 1e-12, %v889_v11 }
 0x269   : > { %v888_v13 = vpop.xlane.xlu1 %887 }
 0x26a   : > { %4629 = vrsqrt.f32 %v891_v12  ;;  %v890_v14 = vmul.f32 0.0078125, %v888_v13 }
 0x26c   : > { %v892_v15 = vadd.f32 1e-12, %v890_v14 }
 0x26e   : > { %4631 = vrsqrt.f32 %v892_v15 }
 0x274   : > { %v4630_v16 = vpop.eup %4629 }
 0x275   : > { %v895_v18 = vmul.f32 %v4630_v16, %v881_v4 }
 0x277   : > { %v903_v20 = vmul.f32 %v4136_v17, %v895_v18 }
 0x278   : > { %v4632_v21 = vpop.eup %4631 }
 0x279   : > { %v911_v22 = vadd.f32 %v4137_v19, %v903_v20  ;;  %v896_v23 = vmul.f32 %v4632_v21, %v882_v8 }
 0x27b   : > { %913 = vst [vmem:[#allocation2] sm:$0xff] %v911_v22  ;;  %v904_v24 = vmul.f32 %v4136_v17, %v896_v23 }
 0x27d   : > { %v912_v25 = vadd.f32 %v4137_v19, %v904_v24 }
 0x27f   : > { %914 = vst [vmem:[#allocation2 + $0x8] sm:$0xff] %v912_v25 }
 0x280 PF: > { %v4648_v26 = vld [vmem:[%s5661_s10 + $0x4] ss:$12 sps:$4 sm:$0xff]   ;;  %v4650_v27 = vld [vmem:[%s5661_s10] ss:$12 sps:$4 sm:$0xff]   ;;  %v5170_v28 = vmov 0   ;;  %v5171_v47 = vmov 0.0   ;;  %v952_v52 = vlaneseq }
 0x281   : > { %1127 = vmatprep.mubr.bf16.mxu0 %v5170_v28  ;;  %1095 = vmatprep.subr.bf16.mxu0 %v4648_v26  ;;  %v4651_v29 = vld [vmem:[%s5661_s10 + $0x1c] ss:$12 sps:$4 sm:$0xff]   ;;  %v4653_v30 = vld [vmem:[%s5661_s10 + $0x18] ss:$12 sps:$4 sm:$0xff]   ;;  %v4654_v31 = vld [vmem:[%s5661_s10 + $0x34] ss:$12 sps:$4 sm:$0xff]  }
 0x282   : > { %1096 = vmatpush1.bf16.msra.mxu0 %v4650_v27  ;;  %v4656_v32 = vld [vmem:[%s5661_s10 + $0x30] ss:$12 sps:$4 sm:$0xff]   ;;  %v4657_v33 = vld [vmem:[%s5661_s10 + $0x4c] ss:$12 sps:$4 sm:$0xff]   ;;  %v4659_v34 = vld [vmem:[%s5661_s10 + $0x48] ss:$12 sps:$4 sm:$0xff]   ;;  %4325 = vmatprep.subr.bf16.mxu1 %v5171_v47 }
 0x283   : > { %1097 = vmatprep.subr.bf16.mxu0 %v4651_v29  ;;  %v4660_v35 = vld [vmem:[%s5661_s10 + $0x64] ss:$12 sps:$4 sm:$0xff]   ;;  %v4662_v36 = vld [vmem:[%s5661_s10 + $0x60] ss:$12 sps:$4 sm:$0xff]   ;;  %v4663_v37 = vld [vmem:[%s5661_s10 + $0x7c] ss:$12 sps:$4 sm:$0xff]  }
 0x284   : > { %v4665_v38 = vld [vmem:[%s5661_s10 + $0x78] ss:$12 sps:$4 sm:$0xff]   ;;  %v4666_v39 = vld [vmem:[%s5661_s10 + $0x94] ss:$12 sps:$4 sm:$0xff]   ;;  %v4668_v40 = vld [vmem:[%s5661_s10 + $0x90] ss:$12 sps:$4 sm:$0xff]  }
 0x285   : > { %v4669_v41 = vld [vmem:[%s5661_s10 + $0xac] ss:$12 sps:$4 sm:$0xff]   ;;  %v4671_v42 = vld [vmem:[%s5661_s10 + $0xa8] ss:$12 sps:$4 sm:$0xff]   ;;  %v4675_v50 = vld [vmem:[%s5661_s10 + $0x50] ss:$12 sps:$4 sm:$0xff]  }
 0x286   : > { %1098 = vmatpush1.bf16.msra.mxu0 %v4653_v30  ;;  %v915_v43 = vld [vmem:[#allocation2] sm:$0xff]  ;;  %v916_v44 = vld [vmem:[#allocation2 + $0x8] sm:$0xff]  ;;  %v5749_v54 = vshrl.u32 %v952_v52, 7  ;;  %vm5172_vm0 = vmmov 0   ;;  %s5173_s5 = smov 32   ;;  %s5174_s12 = smov 96  }
 0x287   : > { %1099 = vmatprep.subr.bf16.mxu0 %v4654_v31  ;;  %v917_v45 = vpack.c.bf16 %v916_v44, %v915_v43  ;;  %v4672_v46 = vld [vmem:[%s5661_s10 + $0x8] ss:$12 sps:$4 sm:$0xff]   ;;  %v4673_v48 = vld [vmem:[%s5661_s10 + $0x20] ss:$12 sps:$4 sm:$0xff]   ;;  %v4674_v49 = vld [vmem:[%s5661_s10 + $0x38] ss:$12 sps:$4 sm:$0xff]   ;;  %4341 = vmatprep.mubr.msk.bf16.mxu1 %vm5172_vm0, %v5171_v47 }
 0x288   : > { %4326 = vmatpush3.bf16.msra.mxu1 %v4672_v46  ;;  %v4676_v51 = vld [vmem:[%s5661_s10 + $0x68] ss:$12 sps:$4 sm:$0xff]   ;;  %v4677_v53 = vld [vmem:[%s5661_s10 + $0x80] ss:$12 sps:$4 sm:$0xff]   ;;  %v4678_v55 = vld [vmem:[%s5661_s10 + $0x98] ss:$12 sps:$4 sm:$0xff]  }
 0x289   : > { %4327 = vmatprep.subr.bf16.mxu1 %v5171_v47  ;;  %v958_v56 = vsub.s32 1, %v5749_v54  ;;  %v5755_v57 = vld [vmem:[%s5690_s18] sm:$0x7]  ;;  %v954_v58 = vsub.s32 0, %v5749_v54  ;;  %s5175_s14 = smov 64   ;;  %vm2079_vm1 = vcmask 261120  }
 0x28a   : > { %1100 = vmatpush1.bf16.msra.mxu0 %v4656_v32  ;;  %v4679_v60 = vld [vmem:[%s5661_s10 + $0xb0] ss:$12 sps:$4 sm:$0xff]   ;;  %v5176_v6 = vmov 1983009808   ;;  %v5177_v8 = vmov 1934713408  }
 0x28b   : > { %1101 = vmatprep.subr.bf16.mxu0 %v4657_v33  ;;  %v959_v59 = vrot.slane %v5755_v57, %v958_v56  ;;  %v955_v63 = vrot.slane %v5755_v57, %v954_v58  ;;  %v1202_v7 = vunpack.c.l.s4 %v5176_v6  ;;  %v1234_v9 = vunpack.c.l.s4 %v5177_v8  ;;  %s6463_s25 = sld [smem:[#allocation45_spill]]  ;;  %s6465_s6 = sld [smem:[#allocation46_spill]] }
 0x28c   : > { %4328 = vmatpush3.bf16.msra.mxu1 %v4673_v48  ;;  %vm2478_vm2 = vcmask 64512   ;;  %vm2578_vm3 = vcmask 1043456   ;;  %vm3242_vm4 = vcmask 523264   ;;  %vm3245_vm5 = vcmask 785408   ;;  %s6468_s17 = sld [smem:[#allocation29_spill]] }
 0x28d   : > { %4329 = vmatprep.subr.bf16.mxu1 %v5171_v47  ;;  %v1203_v10 = vunpack.c.0.s8 %v1202_v7  ;;  %v1235_v13 = vunpack.c.0.s8 %v1234_v9 }
 0x28e   : > { %1102 = vmatpush1.bf16.msra.mxu0 %v4659_v34 }
 0x28f   : > { %1103 = vmatprep.subr.bf16.mxu0 %v4660_v35  ;;  %v5796_v14 = vsub.s32 %v1203_v10, %v5749_v54  ;;  %v5799_v21 = vsub.s32 %v1235_v13, %v5749_v54 }
 0x290   : > { %4330 = vmatpush3.bf16.msra.mxu1 %v4674_v49 }
 0x291   : > { %4331 = vmatprep.subr.bf16.mxu1 %v5171_v47  ;;  %s6466_s8 = scalar_lea.vmem %s6465_s6, %s5672_s24 }
 0x292   : > { %1104 = vmatpush1.bf16.msra.mxu0 %v4662_v36 }
 0x293   : > { %1105 = vmatprep.subr.bf16.mxu0 %v4663_v37 }
 0x294   : > { %4332 = vmatpush3.bf16.msra.mxu1 %v4675_v50 }
 0x295   : > { %4333 = vmatprep.subr.bf16.mxu1 %v5171_v47 }
 0x296   : > { %1106 = vmatpush1.bf16.msra.mxu0 %v4665_v38 }
 0x297   : > { %1107 = vmatprep.subr.bf16.mxu0 %v4666_v39 }
 0x298   : > { %4334 = vmatpush3.bf16.msra.mxu1 %v4676_v51 }
 0x299   : > { %4335 = vmatprep.subr.bf16.mxu1 %v5171_v47 }
 0x29a   : > { %1108 = vmatpush1.bf16.msra.mxu0 %v4668_v40 }
 0x29b   : > { %1109 = vmatprep.subr.bf16.mxu0 %v4669_v41 }
 0x29c   : > { %4336 = vmatpush3.bf16.msra.mxu1 %v4677_v53 }
 0x29d   : > { %4337 = vmatprep.subr.bf16.mxu1 %v5171_v47 }
 0x29e   : > { %1110 = vmatpush1.bf16.msra.mxu0 %v4671_v42 }
 0x29f   : > { %4369 = vmatprep.subr.bf16.mxu0 %v5171_v47 }
 0x2a0   : > { %4338 = vmatpush3.bf16.msra.mxu1 %v4678_v55 }
 0x2a1   : > { %1128 = vmatmul.mubr.bf16.vlgmr.msra.gmra.mrb[0].mxu0 %v917_v45  ;;  %4339 = vmatprep.subr.bf16.mxu1 %v5171_v47 }
 0x2a2   : > { %4371 = vmatprep.mubr.msk.bf16.mxu0 %vm5172_vm0, %v5171_v47 }
 0x2a4   : > { %4340 = vmatpush3.bf16.msra.mxu1 %v4679_v60 }
 0x2a5   : > { %4345 = vmatprep.subr.bf16.mxu1 %v5171_v47 }
 0x2a7   : > { %4342 = vmatmul.mubr.bf16.vlgmr.msra.gmra.mrb[0].mxu1 %v917_v45 }
 0x2a8   : > { %4347 = vmatprep.mubr.msk.bf16.mxu1 %vm5172_vm0, %v5171_v47 }
 0x374   : > { %v1129_v61 = vpop.f32.mrb[0].mxu0 }
 0x375   : > { %v1131_v62 = vpop.f32.mrb[1].mxu0  ;;  %v1130_v3 = vadd.f32 %v1129_v61, %v955_v63 }
 0x376   : > { %v1132_v0 = vadd.f32 %v1131_v62, %v959_v59  ;;  %v1133_v1 = vpop.f32.mrb[2].mxu0 }
 0x377   : > { %v1135_v2 = vpop.f32.mrb[3].mxu0  ;;  %v5785_v5 = vadd.f32 %v1133_v1, %v955_v63 }
 0x378   : > { %1493 = vrot.lane.b32.xlu1 %v1132_v0, %s5173_s5  ;;  %1481 = vrot.lane.b32.xlu0 %v1132_v0, %s5174_s12  ;;  %v5779_v4 = vadd.f32 %v1135_v2, %v959_v59 }
 0x37c   : > { %1487 = vrot.lane.b32.xlu0 %v1132_v0, %s5175_s14  ;;  %1181 = vrot.lane.b32.xlu1 %v1130_v3, %s5174_s12 }
 0x380   : > { %1187 = vrot.lane.b32.xlu0 %v1130_v3, %s5175_s14  ;;  %1193 = vrot.lane.b32.xlu1 %v1130_v3, %s5173_s5 }
 0x384   : > { %1483 = vrot.lane.b32.xlu0 %v5779_v4, %s5174_s12  ;;  %1489 = vrot.lane.b32.xlu1 %v5779_v4, %s5175_s14 }
 0x388   : > { %1495 = vrot.lane.b32.xlu0 %v5779_v4, %s5173_s5  ;;  %1183 = vrot.lane.b32.xlu1 %v5785_v5, %s5174_s12 }
 0x38c   : > { %1189 = vrot.lane.b32.xlu0 %v5785_v5, %s5175_s14  ;;  %1195 = vrot.lane.b32.xlu1 %v5785_v5, %s5173_s5 }
 0x3ea   : > { %v1494_v11 = vpop.permute.xlu1 %1493  ;;  %v1482_v12 = vpop.permute.xlu0 %1481 }
 0x3eb   : > { %v1515_v15 = vcombine.low %v1482_v12, %v1494_v11  ;;  %v1516_v16 = vcombine.high %v1482_v12, %v1494_v11 }
 0x3ed   : > { %v1523_v22 = vrot.slane %v1515_v15, %v5796_v14  ;;  %v1530_v23 = vrot.slane %v1516_v16, %v5796_v14 }
 0x3ee   : > { %v1488_v17 = vpop.permute.xlu0 %1487  ;;  %v1182_v18 = vpop.permute.xlu1 %1181 }
 0x3ef   : > { %v1499_v19 = vcombine.low %v1132_v0, %v1488_v17  ;;  %v1500_v20 = vcombine.high %v1132_v0, %v1488_v17 }
 0x3f1   : > { %v1507_v24 = vrot.slane %v1499_v19, %v5796_v14  ;;  %v1514_v25 = vrot.slane %v1500_v20, %v5796_v14 }
 0x3f2   : > { %v1188_v26 = vpop.permute.xlu0 %1187  ;;  %v1194_v27 = vpop.permute.xlu1 %1193 }
 0x3f3   : > { %v1531_v29 = vcombine.low %v1507_v24, %v1523_v22  ;;  %v1532_v30 = vcombine.high %v1507_v24, %v1523_v22  ;;  %v1547_v31 = vcombine.low %v1514_v25, %v1530_v23  ;;  %v1548_v32 = vcombine.high %v1514_v25, %v1530_v23 }
 0x3f4   : > { %v1199_v33 = vcombine.low %v1130_v3, %v1188_v26  ;;  %v1200_v34 = vcombine.high %v1130_v3, %v1188_v26  ;;  %v1215_v35 = vcombine.low %v1182_v18, %v1194_v27  ;;  %v1216_v36 = vcombine.high %v1182_v18, %v1194_v27 }
 0x3f5   : > { %v1539_v37 = vrot.slane %v1531_v29, %v5799_v21  ;;  %v1546_v38 = vrot.slane %v1532_v30, %v5799_v21  ;;  %v1555_v39 = vrot.slane %v1547_v31, %v5799_v21  ;;  %v1562_v40 = vrot.slane %v1548_v32, %v5799_v21 }
 0x3f6   : > { %v1207_v41 = vrot.slane %v1199_v33, %v5796_v14  ;;  %v1214_v42 = vrot.slane %v1200_v34, %v5796_v14  ;;  %v1223_v43 = vrot.slane %v1215_v35, %v5796_v14  ;;  %v1230_v44 = vrot.slane %v1216_v36, %v5796_v14  ;;  %v1484_v45 = vpop.permute.xlu0 %1483  ;;  %v1490_v46 = vpop.permute.xlu1 %1489 }
 0x3f7   : > { %v1635_v52 = vcombine.low %v1539_v37, %v1546_v38  ;;  %v4166_v53 = vcombine.high %v1539_v37, %v1546_v38  ;;  %v1651_v55 = vcombine.low %v1555_v39, %v1562_v40  ;;  %v1567_v1 = vcombine.low %v5779_v4, %v1490_v46 }
 0x3f8   : > { %v1231_v48 = vcombine.low %v1207_v41, %v1223_v43  ;;  %v1232_v49 = vcombine.high %v1207_v41, %v1223_v43  ;;  %v1247_v50 = vcombine.low %v1214_v42, %v1230_v44  ;;  %v1248_v51 = vcombine.high %v1214_v42, %v1230_v44 }
 0x3f9   : > { %v1568_v2 = vcombine.high %v5779_v4, %v1490_v46  ;;  %v4167_v7 = vcombine.high %v1555_v39, %v1562_v40  ;;  %v1575_v11 = vrot.slane %v1567_v1, %v5796_v14  ;;  %v5824_v16 = vrot.slane %v1635_v52, %v5796_v14 }
 0x3fa   : > { %v1239_v59 = vrot.slane %v1231_v48, %v5799_v21  ;;  %v1246_v60 = vrot.slane %v1232_v49, %v5799_v21  ;;  %v1255_v61 = vrot.slane %v1247_v50, %v5799_v21  ;;  %v1262_v62 = vrot.slane %v1248_v51, %v5799_v21  ;;  %v1496_v63 = vpop.permute.xlu0 %1495  ;;  %v1184_v0 = vpop.permute.xlu1 %1183 }
 0x3fb   : > { %v1583_v3 = vcombine.low %v1484_v45, %v1496_v63  ;;  %v1584_v6 = vcombine.high %v1484_v45, %v1496_v63  ;;  %v1582_v12 = vrot.slane %v1568_v2, %v5796_v14  ;;  %v5827_v17 = vrot.slane %v4166_v53, %v5796_v14 }
 0x3fc   : > { %v1335_v8 = vcombine.low %v1239_v59, %v1246_v60  ;;  %v4162_v9 = vcombine.high %v1239_v59, %v1246_v60  ;;  %v1351_v10 = vcombine.low %v1255_v61, %v1262_v62  ;;  %v5830_v4 = vrot.slane %v1651_v55, %v5796_v14 }
 0x3fd   : > { %v1591_v13 = vrot.slane %v1583_v3, %v5796_v14  ;;  %v1598_v15 = vrot.slane %v1584_v6, %v5796_v14  ;;  %v4163_v18 = vcombine.high %v1255_v61, %v1262_v62  ;;  %v5833_v26 = vrot.slane %v4167_v7, %v5796_v14 }
 0x3fe   : > { %v1190_v24 = vpop.permute.xlu0 %1189  ;;  %v1196_v25 = vpop.permute.xlu1 %1195  ;;  %v5836_v27 = vrot.slane %v1335_v8, %v5796_v14  ;;  %v5839_v29 = vrot.slane %v4162_v9, %v5796_v14  ;;  %v5842_v30 = vrot.slane %v1351_v10, %v5796_v14  ;;  %v1667_v61 = vcombine.low %v5824_v16, %v5827_v17 }
 0x3ff   : > { %v1599_v19 = vcombine.low %v1575_v11, %v1591_v13  ;;  %v1600_v20 = vcombine.high %v1575_v11, %v1591_v13  ;;  %v1615_v22 = vcombine.low %v1582_v12, %v1598_v15  ;;  %v1616_v23 = vcombine.high %v1582_v12, %v1598_v15 }
 0x400   : > { %v1267_v35 = vcombine.low %v5785_v5, %v1190_v24  ;;  %v1268_v36 = vcombine.high %v5785_v5, %v1190_v24  ;;  %v1283_v37 = vcombine.low %v1184_v0, %v1196_v25  ;;  %v1284_v38 = vcombine.high %v1184_v0, %v1196_v25 }
 0x401   : > { %v1607_v31 = vrot.slane %v1599_v19, %v5799_v21  ;;  %v1614_v32 = vrot.slane %v1600_v20, %v5799_v21  ;;  %v1623_v33 = vrot.slane %v1615_v22, %v5799_v21  ;;  %v1630_v34 = vrot.slane %v1616_v23, %v5799_v21 }
 0x402   : > { %v5851_v39 = vrot.slane %v4163_v18, %v5796_v14  ;;  %v1275_v43 = vrot.slane %v1267_v35, %v5796_v14  ;;  %v1282_v44 = vrot.slane %v1268_v36, %v5796_v14  ;;  %v1291_v45 = vrot.slane %v1283_v37, %v5796_v14 }
 0x403   : > { %v1703_v40 = vcombine.low %v1607_v31, %v1614_v32  ;;  %v4168_v41 = vcombine.high %v1607_v31, %v1614_v32  ;;  %v1719_v42 = vcombine.low %v1623_v33, %v1630_v34  ;;  %v1298_v46 = vrot.slane %v1284_v38, %v5796_v14 }
 0x404   : > { %v1367_v48 = vcombine.low %v5836_v27, %v5839_v29  ;;  %v4169_v50 = vcombine.high %v1623_v33, %v1630_v34  ;;  %v1299_v51 = vcombine.low %v1275_v43, %v1291_v45  ;;  %v1300_v52 = vcombine.high %v1275_v43, %v1291_v45 }
 0x405   : > { %v1710_v5 = vrot.slane %v1703_v40, %v5796_v14  ;;  %v1718_v49 = vrot.slane %v4168_v41, %v5796_v14  ;;  %v1315_v53 = vcombine.low %v1282_v44, %v1298_v46  ;;  %v1316_v55 = vcombine.high %v1282_v44, %v1298_v46 }
 0x406   : > { %v1383_v59 = vcombine.low %v5842_v30, %v5851_v39  ;;  %v1726_v60 = vrot.slane %v1719_v42, %v5796_v14  ;;  %v1683_v62 = vcombine.low %v5830_v4, %v5833_v26  ;;  %v1307_v63 = vrot.slane %v1299_v51, %v5799_v21 }
 0x407   : > { %v1314_v0 = vrot.slane %v1300_v52, %v5799_v21  ;;  %v1323_v1 = vrot.slane %v1315_v53, %v5799_v21  ;;  %v1330_v2 = vrot.slane %v1316_v55, %v5799_v21  ;;  %v1734_v3 = vrot.slane %v4169_v50, %v5796_v14 }
 0x408   : > { %v1675_v6 = vrot.slane %v1667_v61, %v5799_v21  ;;  %v1691_v7 = vrot.slane %v1683_v62, %v5799_v21  ;;  %v1735_v8 = vcombine.low %v1710_v5, %v1718_v49  ;;  %v1375_v15 = vrot.slane %v1367_v48, %v5799_v21 }
 0x409   : > { %v1403_v9 = vcombine.low %v1307_v63, %v1314_v0  ;;  %v4164_v10 = vcombine.high %v1307_v63, %v1314_v0  ;;  %v1419_v11 = vcombine.low %v1323_v1, %v1330_v2  ;;  %v4165_v12 = vcombine.high %v1323_v1, %v1330_v2 }
 0x40a   : > { %v1699_v13 = vcombine.low %v1675_v6, %v1691_v7  ;;  %v1391_v24 = vrot.slane %v1383_v59, %v5799_v21  ;;  %v5882_v25 = vrot.slane %v1735_v8, %v5799_v21  ;;  %v1751_v31 = vcombine.low %v1726_v60, %v1734_v3 }
 0x40b   : > { %v1410_v18 = vrot.slane %v1403_v9, %v5796_v14  ;;  %v1418_v19 = vrot.slane %v4164_v10, %v5796_v14  ;;  %v1426_v20 = vrot.slane %v1419_v11, %v5796_v14  ;;  %v1434_v22 = vrot.slane %v4165_v12, %v5796_v14 }
 0x40c   : > { %v1771_v23 = vpack.c.bf16 %v1699_v13, %v1699_v13  ;;  %v1700_v34 = vcombine.high %v1675_v6, %v1691_v7  ;;  %v1759_v36 = vrot.slane %v1751_v31, %v5799_v21  ;;  %v1668_v37 = vcombine.high %v5824_v16, %v5827_v17 }
 0x40d   : > { %v1435_v32 = vcombine.low %v1410_v18, %v1418_v19  ;;  %v1451_v33 = vcombine.low %v1426_v20, %v1434_v22  ;;  %v1684_v38 = vcombine.high %v5830_v4, %v5833_v26  ;;  %v1399_v40 = vcombine.low %v1375_v15, %v1391_v24 }
 0x40e   : > { %v2084_v35 = vsel %vm2079_vm1, %v1771_v23, 0  ;;  %v1767_v41 = vcombine.low %v5882_v25, %v1759_v36  ;;  %v1736_v42 = vcombine.high %v1710_v5, %v1718_v49  ;;  %v1752_v43 = vcombine.high %v1726_v60, %v1734_v3 }
 0x40f   : > { %4346 = vmatpush3.bf16.xpose.msra.mxu1 %v2084_v35  ;;  %v1772_v44 = vpack.c.bf16 %v1700_v34, %v1700_v34  ;;  %v1682_v45 = vrot.slane %v1668_v37, %v5799_v21  ;;  %v5894_v46 = vrot.slane %v1435_v32, %v5799_v21  ;;  %v1459_v48 = vrot.slane %v1451_v33, %v5799_v21  ;;  %v1172_v37 = vpop.f32.mrb[0].mxu1 }
 0x410   : > { %4351 = vmatprep.subr.bf16.mxu1 %v5171_v47  ;;  %v1775_v50 = vpack.c.bf16 %v1767_v41, %v1767_v41  ;;  %v1698_v16 = vrot.slane %v1684_v38, %v5799_v21  ;;  %v1750_v17 = vrot.slane %v1736_v42, %v5799_v21  ;;  %v1766_v4 = vrot.slane %v1752_v43, %v5799_v21 }
 0x411   : > { %v1471_v26 = vpack.c.bf16 %v1399_v40, %v1399_v40  ;;  %v1436_v49 = vcombine.high %v1410_v18, %v1418_v19  ;;  %v1452_v52 = vcombine.high %v1426_v20, %v1434_v22  ;;  %v2130_v53 = vsel %vm2079_vm1, %v1772_v44, 0  ;;  %v4343_v40 = vpop.f32.mrb[1].mxu1 }
 0x412   : > { %v2268_v51 = vsel %vm2079_vm1, %v1775_v50, 0  ;;  %v1769_v5 = vcombine.low %v1750_v17, %v1766_v4  ;;  %v1701_v55 = vcombine.low %v1682_v45, %v1698_v16  ;;  %v1467_v59 = vcombine.low %v5894_v46, %v1459_v48  ;;  %v1175_v41 = vpop.f32.mrb[2].mxu1 }
 0x413   : > { %4370 = vmatpush3.bf16.xpose.msra.mxu0 %v2268_v51  ;;  %v1368_v60 = vcombine.high %v5836_v27, %v5839_v29  ;;  %v1384_v61 = vcombine.high %v5842_v30, %v5851_v39  ;;  %v1400_v62 = vcombine.high %v1375_v15, %v1391_v24  ;;  %v1450_v2 = vrot.slane %v1436_v49, %v5799_v21  ;;  %v4344_v43 = vpop.f32.mrb[3].mxu1 }
 0x414   : > { %4381 = vmatprep.subr.bf16.mxu0 %v5171_v47  ;;  %v1777_v63 = vpack.c.bf16 %v1769_v5, %v1769_v5  ;;  %v1773_v0 = vpack.c.bf16 %v1701_v55, %v1701_v55  ;;  %v1475_v1 = vpack.c.bf16 %v1467_v59, %v1467_v59  ;;  %v1466_v3 = vrot.slane %v1452_v52, %v5799_v21 }
 0x415   : > { %v1472_v6 = vpack.c.bf16 %v1400_v62, %v1400_v62  ;;  %v1382_v27 = vrot.slane %v1368_v60, %v5799_v21  ;;  %v1398_v29 = vrot.slane %v1384_v61, %v5799_v21  ;;  %v1702_v39 = vcombine.high %v1682_v45, %v1698_v16  ;;  %v4182_v45 = vld [vmem:[#allocation9] ss:$0 sm:$0xff] }
 0x416   : > { %4348 = vmatmul.mubr.msk.bf16.vlgmr.msra.gmra.mrb[4].mxu1 %vm2079_vm1, %v1471_v26  ;;  %v2360_v7 = vsel %vm2079_vm1, %v1777_v63, 0  ;;  %v2176_v30 = vsel %vm2079_vm1, %v1773_v0, 0  ;;  %v1469_v8 = vcombine.low %v1450_v2, %v1466_v3  ;;  %v1768_v15 = vcombine.high %v5882_v25, %v1759_v36  ;;  %v4183_v26 = vld [vmem:[#allocation9 + $0x1] ss:$0 sm:$0xff] }
 0x417   : > { %4352 = vmatpush3.bf16.xpose.msra.mxu1 %v2130_v53  ;;  %4353 = vmatprep.mubr.msk.bf16.mxu1 %vm5172_vm0, %v5171_v47  ;;  %v1401_v9 = vcombine.low %v1382_v27, %v1398_v29  ;;  %v1774_v10 = vpack.c.bf16 %v1702_v39, %v1702_v39  ;;  %v1402_v18 = vcombine.high %v1382_v27, %v1398_v29  ;;  %v962_v35 = vsub.s32 2, %v5749_v54 }
 0x418   : > { %4357 = vmatprep.subr.bf16.mxu1 %v5171_v47  ;;  %v1477_v11 = vpack.c.bf16 %v1469_v8, %v1469_v8  ;;  %v1776_v19 = vpack.c.bf16 %v1768_v15, %v1768_v15  ;;  %v1770_v23 = vcombine.high %v1750_v17, %v1766_v4  ;;  %v1468_v24 = vcombine.high %v5894_v46, %v1459_v48 }
 0x419   : > { %v1473_v12 = vpack.c.bf16 %v1401_v9, %v1401_v9  ;;  %v2222_v13 = vsel %vm2079_vm1, %v1774_v10, 0  ;;  %v1474_v20 = vpack.c.bf16 %v1402_v18, %v1402_v18  ;;  %v1470_v33 = vcombine.high %v1450_v2, %v1466_v3 }
 0x41a   : > { %4372 = vmatmul.mubr.msk.bf16.vlgmr.msra.gmra.mrb[4].mxu0 %vm2079_vm1, %v1475_v1  ;;  %v2314_v22 = vsel %vm2079_vm1, %v1776_v19, 0  ;;  %v1778_v25 = vpack.c.bf16 %v1770_v23, %v1770_v23  ;;  %v1476_v31 = vpack.c.bf16 %v1468_v24, %v1468_v24  ;;  %v963_v36 = vrot.slane %v5755_v57, %v962_v35 }
 0x41b   : > { %4382 = vmatpush3.bf16.xpose.msra.mxu0 %v2360_v7  ;;  %4383 = vmatprep.mubr.msk.bf16.mxu0 %vm5172_vm0, %v5171_v47  ;;  %v1478_v34 = vpack.c.bf16 %v1470_v33, %v1470_v33 }
 0x41c   : > { %4393 = vmatprep.subr.bf16.mxu0 %v5171_v47  ;;  %v2406_v32 = vsel %vm2079_vm1, %v1778_v25, 0  ;;  %v5951_v38 = vadd.f32 %v1172_v37, %v963_v36  ;;  %v5955_v42 = vadd.f32 %v1175_v41, %v963_v36 }
 0x41e   : > { %4354 = vmatmul.mubr.msk.bf16.vlgmr.msra.gmra.mrb[8].mxu1 %vm2079_vm1, %v1472_v6  ;;  %1781 = vrot.lane.b32.xlu1 %v5951_v38, %s5174_s12 }
 0x41f   : > { %4358 = vmatpush3.bf16.xpose.msra.mxu1 %v2176_v30  ;;  %4359 = vmatprep.mubr.msk.bf16.mxu1 %vm5172_vm0, %v5171_v47 }
 0x420   : > { %4363 = vmatprep.subr.bf16.mxu1 %v5171_v47 }
 0x422   : > { %4384 = vmatmul.mubr.msk.bf16.vlgmr.msra.gmra.mrb[8].mxu0 %vm2079_vm1, %v1477_v11 }
 0x423   : > { %4395 = vmatprep.mubr.msk.bf16.mxu0 %vm5172_vm0, %v5171_v47 }
 0x426   : > { %4360 = vmatmul.mubr.msk.bf16.vlgmr.msra.gmra.mrb[12].mxu1 %vm2079_vm1, %v1473_v12 }
 0x427   : > { %4364 = vmatpush3.bf16.xpose.msra.mxu1 %v2222_v13  ;;  %4365 = vmatprep.mubr.msk.bf16.mxu1 %vm5172_vm0, %v5171_v47 }
 0x428   : > { %4375 = vmatprep.subr.bf16.mxu1 %v5171_v47 }
 0x42e   : > { %4366 = vmatmul.mubr.msk.bf16.vlgmr.msra.gmra.mrb[16].mxu1 %vm2079_vm1, %v1474_v20 }
 0x42f   : > { %4376 = vmatpush3.bf16.xpose.msra.mxu1 %v2314_v22  ;;  %4377 = vmatprep.mubr.msk.bf16.mxu1 %vm5172_vm0, %v5171_v47 }
 0x430   : > { %4387 = vmatprep.subr.bf16.mxu1 %v5171_v47 }
 0x436   : > { %4378 = vmatmul.mubr.msk.bf16.vlgmr.msra.gmra.mrb[20].mxu1 %vm2079_vm1, %v1476_v31 }
 0x437   : > { %4388 = vmatpush3.bf16.xpose.msra.mxu1 %v2406_v32  ;;  %4389 = vmatprep.mubr.msk.bf16.mxu1 %vm5172_vm0, %v5171_v47 }
 0x438   : > { %4399 = vmatprep.subr.bf16.mxu1 %v5171_v47 }
 0x43e   : > { %4390 = vmatmul.mubr.msk.bf16.vlgmr.msra.gmra.mrb[24].mxu1 %vm2079_vm1, %v1478_v34 }
 0x43f   : > { %4401 = vmatprep.mubr.msk.bf16.mxu1 %vm5172_vm0, %v5171_v47 }
 0x4e9   : > { %v2120_v44 = vpop.f32.mrb[4].mxu1 }
 0x4ea   : > { %v2448_v46 = vmul.f32 0.17677669, %v2120_v44  ;;  %v4349_v48 = vpop.f32.mrb[5].mxu1 }
 0x4eb   : > { %v2123_v50 = vpop.f32.mrb[6].mxu1 }
 0x4ec   : > { %v4350_v16 = vpop.f32.mrb[7].mxu1  ;;  %v5957_v17 = vadd.f32 %v4182_v45, %v2448_v46 }
 0x4ed   : > { %v2304_v4 = vpop.f32.mrb[4].mxu0  ;;  %v1782_v16 = vpop.permute.xlu1 %1781 }
 0x4ee   : > { %v2479_v57 = vsel %vm2478_vm2, %v5957_v17, -inf  ;;  %v2452_v51 = vmul.f32 0.17677669, %v2304_v4  ;;  %v4373_v5 = vpop.f32.mrb[5].mxu0 }
 0x4ef   : > { %2480 = vmax.xlane.f32.xlu0 %v2479_v57  ;;  %v2307_v52 = vpop.f32.mrb[6].mxu0 }
 0x4f0   : > { %v4374_v59 = vpop.f32.mrb[7].mxu0  ;;  %v2474_v60 = vadd.f32 %v4183_v26, %v2452_v51 }
 0x4f1   : > { %v2166_v49 = vpop.f32.mrb[8].mxu1 }
 0x4f2   : > { %v2449_v53 = vmul.f32 0.17677669, %v2166_v49  ;;  %v4355_v55 = vpop.f32.mrb[9].mxu1  ;;  %v2491_v63 = vsel %vm2478_vm2, %v2474_v60, -inf }
 0x4f3   : > { %v2169_v61 = vpop.f32.mrb[10].mxu1  ;;  %2492 = vmax.xlane.f32.xlu1 %v2491_v63 }
 0x4f4   : > { %v4356_v62 = vpop.f32.mrb[11].mxu1  ;;  %v2471_v0 = vadd.f32 %v4182_v45, %v2449_v53 }
 0x4f5   : > { %v2396_v1 = vpop.f32.mrb[8].mxu0 }
 0x4f6   : > { %v2454_v2 = vmul.f32 0.17677669, %v2396_v1  ;;  %v4385_v3 = vpop.f32.mrb[9].mxu0  ;;  %v2482_v6 = vsel %vm2478_vm2, %v2471_v0, -inf }
 0x4f7   : > { %2483 = vmax.xlane.f32.xlu1 %v2482_v6  ;;  %v2399_v27 = vpop.f32.mrb[10].mxu0 }
 0x4f8   : > { %v4386_v39 = vpop.f32.mrb[11].mxu0  ;;  %v5963_v8 = vadd.f32 %v4183_v26, %v2454_v2 }
 0x4f9   : > { %v2212_v7 = vpop.f32.mrb[12].mxu1 }
 0x4fa   : > { %v2450_v29 = vmul.f32 0.17677669, %v2212_v7  ;;  %v4361_v30 = vpop.f32.mrb[13].mxu1  ;;  %v2497_v12 = vsel %vm2478_vm2, %v5963_v8, -inf }
 0x4fb   : > { %v2215_v9 = vpop.f32.mrb[14].mxu1  ;;  %2498 = vmax.xlane.f32.xlu1 %v2497_v12 }
 0x4fc   : > { %v4362_v10 = vpop.f32.mrb[15].mxu1  ;;  %v2472_v11 = vadd.f32 %v4182_v45, %v2450_v29 }
 0x4fe   : > { %v2485_v13 = vsel %vm2478_vm2, %v2472_v11, -inf }
 0x4ff   : > { %2486 = vmax.xlane.f32.xlu0 %v2485_v13 }
 0x501   : > { %v2258_v15 = vpop.f32.mrb[16].mxu1 }
 0x502   : > { %v2451_v18 = vmul.f32 0.17677669, %v2258_v15  ;;  %v4367_v19 = vpop.f32.mrb[17].mxu1 }
 0x503   : > { %v2261_v20 = vpop.f32.mrb[18].mxu1 }
 0x504   : > { %v4368_v22 = vpop.f32.mrb[19].mxu1  ;;  %v2473_v23 = vadd.f32 %v4182_v45, %v2451_v18 }
 0x506   : > { %v2488_v24 = vsel %vm2478_vm2, %v2473_v23, -inf }
 0x507   : > { %2489 = vmax.xlane.f32.xlu0 %v2488_v24 }
 0x509   : > { %v2350_v25 = vpop.f32.mrb[20].mxu1 }
 0x50a   : > { %v2453_v31 = vmul.f32 0.17677669, %v2350_v25  ;;  %v4379_v32 = vpop.f32.mrb[21].mxu1 }
 0x50b   : > { %v2353_v33 = vpop.f32.mrb[22].mxu1 }
 0x50c   : > { %v4380_v34 = vpop.f32.mrb[23].mxu1  ;;  %v5969_v35 = vadd.f32 %v4183_v26, %v2453_v31  ;;  %1793 = vrot.lane.b32.xlu1 %v5951_v38, %s5173_s5 }
 0x50e   : > { %v2494_v36 = vsel %vm2478_vm2, %v5969_v35, -inf }
 0x50f   : > { %2495 = vmax.xlane.f32.xlu0 %v2494_v36 }
 0x511   : > { %v2442_v37 = vpop.f32.mrb[24].mxu1 }
 0x512   : > { %v2455_v40 = vmul.f32 0.17677669, %v2442_v37  ;;  %v4391_v41 = vpop.f32.mrb[25].mxu1 }
 0x513   : > { %v2445_v43 = vpop.f32.mrb[26].mxu1 }
 0x514   : > { %v4392_v44 = vpop.f32.mrb[27].mxu1  ;;  %v5975_v45 = vadd.f32 %v4183_v26, %v2455_v40 }
 0x516   : > { %v2500_v46 = vsel %vm2478_vm2, %v5975_v45, -inf }
 0x517   : > { %2501 = vmax.xlane.f32.xlu0 %v2500_v46 }
 0x52d   : > { %1787 = vrot.lane.b32.xlu0 %v5951_v38, %s5175_s14 }
 0x57c   : > { %v2481_v48 = vpop.xlane.xlu0 %2480 }
 0x57d   : > { %v2503_v50 = vsub.f32 %v5957_v17, %v2481_v48 }
 0x57f   : > { %v2511_v57 = vmul.f32 1.442695, %v2503_v50 }
 0x580   : > { %v2493_v4 = vpop.xlane.xlu1 %2492 }
 0x581   : > { %4728 = vpow2.f32 %v2511_v57  ;;  %v2507_v51 = vsub.f32 %v2474_v60, %v2493_v4 }
 0x583   : > { %v2519_v5 = vmul.f32 1.442695, %v2507_v51 }
 0x584   : > { %v2484_v49 = vpop.xlane.xlu1 %2483 }
 0x585   : > { %4730 = vpow2.f32 %v2519_v5  ;;  %v2504_v26 = vsub.f32 %v2471_v0, %v2484_v49 }
 0x587   : > { %v2513_v52 = vmul.f32 1.442695, %v2504_v26 }
 0x588   : > { %v2499_v27 = vpop.xlane.xlu1 %2498 }
 0x589   : > { %4732 = vpow2.f32 %v2513_v52 }
 0x58b   : > { %v5982_v53 = vpop.eup %4728 }
 0x58c   : > { %v2487_v55 = vpop.xlane.xlu0 %2486  ;;  %v2527_v59 = vsel %vm2478_vm2, %v5982_v53, 0.0  ;;  %v1794_v39 = vpop.permute.xlu1 %1793 }
 0x58d   : > { %v2505_v61 = vsub.f32 %v2472_v11, %v2487_v55  ;;  %2528 = vadd.xlane.f32.xlu1 %v2527_v59  ;;  %v1815_v11 = vcombine.low %v1782_v16, %v1794_v39  ;;  %v1816_v12 = vcombine.high %v1782_v16, %v1794_v39  ;;  %v2509_v39 = vsub.f32 %v5963_v8, %v2499_v27 }
 0x58f   : > { %v2515_v17 = vmul.f32 1.442695, %v2505_v61  ;;  %v5986_v62 = vpop.eup %4730  ;;  %v1823_v19 = vrot.slane %v1815_v11, %v5796_v14  ;;  %v1830_v20 = vrot.slane %v1816_v12, %v5796_v14 }
 0x590   : > { %v2539_v60 = vsel %vm2478_vm2, %v5986_v62, 0.0 }
 0x591   : > { %4734 = vpow2.f32 %v2515_v17  ;;  %2540 = vadd.xlane.f32.xlu0 %v2539_v60 }
 0x593   : > { %v5990_v0 = vpop.eup %4732 }
 0x594   : > { %v2490_v63 = vpop.xlane.xlu0 %2489  ;;  %v2530_v2 = vsel %vm2478_vm2, %v5990_v0, 0.0 }
 0x595   : > { %v2506_v1 = vsub.f32 %v2473_v23, %v2490_v63  ;;  %2531 = vadd.xlane.f32.xlu0 %v2530_v2 }
 0x597   : > { %v2517_v3 = vmul.f32 1.442695, %v2506_v1 }
 0x599   : > { %4736 = vpow2.f32 %v2517_v3 }
 0x59b   : > { %v5994_v6 = vpop.eup %4734 }
 0x59c   : > { %v2533_v7 = vsel %vm2478_vm2, %v5994_v6, 0.0  ;;  %v2496_v29 = vpop.xlane.xlu0 %2495 }
 0x59d   : > { %2534 = vadd.xlane.f32.xlu1 %v2533_v7  ;;  %v2508_v1 = vsub.f32 %v5969_v35, %v2496_v29 }
 0x59f   : > { %v2521_v7 = vmul.f32 1.442695, %v2508_v1 }
 0x5a1   : > { %4738 = vpow2.f32 %v2521_v7 }
 0x5a3   : > { %v5998_v30 = vpop.eup %4736 }
 0x5a4   : > { %v6000_v9 = vpop.xlane.xlu0 %2501  ;;  %v2536_v10 = vsel %vm2478_vm2, %v5998_v30, 0.0 }
 0x5a5   : > { %2537 = vadd.xlane.f32.xlu0 %v2536_v10  ;;  %v2523_v10 = vmul.f32 1.442695, %v2509_v39  ;;  %v2510_v8 = vsub.f32 %v5975_v45, %v6000_v9 }
 0x5a7   : > { %4740 = vpow2.f32 %v2523_v10  ;;  %v2525_v27 = vmul.f32 1.442695, %v2510_v8 }
 0x5a8   : > { %v1788_v13 = vpop.permute.xlu0 %1787 }
 0x5a9   : > { %v1799_v15 = vcombine.low %v5951_v38, %v1788_v13  ;;  %v1800_v18 = vcombine.high %v5951_v38, %v1788_v13  ;;  %4742 = vpow2.f32 %v2525_v27 }
 0x5ab   : > { %v1807_v22 = vrot.slane %v1799_v15, %v5796_v14  ;;  %v1814_v23 = vrot.slane %v1800_v18, %v5796_v14  ;;  %v6032_v11 = vpop.eup %4738 }
 0x5ac   : > { %v2542_v35 = vsel %vm2478_vm2, %v6032_v11, 0.0 }
 0x5ad   : > { %v1831_v24 = vcombine.low %v1807_v22, %v1823_v19  ;;  %v1832_v25 = vcombine.high %v1807_v22, %v1823_v19  ;;  %v1847_v31 = vcombine.low %v1814_v23, %v1830_v20  ;;  %v1848_v32 = vcombine.high %v1814_v23, %v1830_v20 }
 0x5ae   : > { %1789 = vrot.lane.b32.xlu1 %v5955_v42, %s5175_s14 }
 0x5af   : > { %v1839_v33 = vrot.slane %v1831_v24, %v5799_v21  ;;  %v1846_v34 = vrot.slane %v1832_v25, %v5799_v21  ;;  %v1855_v38 = vrot.slane %v1847_v31, %v5799_v21  ;;  %v1862_v36 = vrot.slane %v1848_v32, %v5799_v21 }
 0x5b1   : > { %v1935_v37 = vcombine.low %v1839_v33, %v1846_v34  ;;  %v4170_v40 = vcombine.high %v1839_v33, %v1846_v34  ;;  %v1951_v41 = vcombine.low %v1855_v38, %v1862_v36  ;;  %v4171_v43 = vcombine.high %v1855_v38, %v1862_v36  ;;  %v6036_v29 = vpop.eup %4740 }
 0x5b2   : > { %v2545_v12 = vsel %vm2478_vm2, %v6036_v29, 0.0 }
 0x5b3   : > { %v1942_v44 = vrot.slane %v1935_v37, %v5796_v14  ;;  %v1950_v46 = vrot.slane %v4170_v40, %v5796_v14  ;;  %v1958_v48 = vrot.slane %v1951_v41, %v5796_v14  ;;  %v1966_v50 = vrot.slane %v4171_v43, %v5796_v14  ;;  %v6044_v13 = vpop.eup %4742 }
 0x5b4   : > { %v2548_v15 = vsel %vm2478_vm2, %v6044_v13, 0.0 }
 0x5b5   : > { %v1967_v16 = vcombine.low %v1942_v44, %v1950_v46  ;;  %v1983_v57 = vcombine.low %v1958_v48, %v1966_v50  ;;  %v1968_v4 = vcombine.high %v1942_v44, %v1950_v46  ;;  %v1984_v51 = vcombine.high %v1958_v48, %v1966_v50 }
 0x5b7   : > { %v1975_v5 = vrot.slane %v1967_v16, %v5799_v21  ;;  %v1991_v49 = vrot.slane %v1983_v57, %v5799_v21  ;;  %v1982_v26 = vrot.slane %v1968_v4, %v5799_v21  ;;  %v1998_v52 = vrot.slane %v1984_v51, %v5799_v21 }
 0x5b9   : > { %v1999_v55 = vcombine.low %v1975_v5, %v1991_v49  ;;  %v2000_v59 = vcombine.high %v1975_v5, %v1991_v49  ;;  %v2001_v61 = vcombine.low %v1982_v26, %v1998_v52  ;;  %v2002_v17 = vcombine.high %v1982_v26, %v1998_v52 }
 0x5bb   : > { %1783 = vrot.lane.b32.xlu0 %v5955_v42, %s5174_s12  ;;  %v2071_v60 = vpack.c.bf16 %v1999_v55, %v1999_v55  ;;  %v2072_v63 = vpack.c.bf16 %v2000_v59, %v2000_v59  ;;  %v2073_v24 = vpack.c.bf16 %v2001_v61, %v2001_v61  ;;  %v2074_v33 = vpack.c.bf16 %v2002_v17, %v2002_v17 }
 0x5bd   : > { %v2580_v2 = vsel %vm2578_vm3, %v2071_v60, 0  ;;  %v2626_v3 = vsel %vm2578_vm3, %v2072_v63, 0  ;;  %v2672_v45 = vsel %vm2578_vm3, %v2073_v24, 0  ;;  %v2718_v38 = vsel %vm2578_vm3, %v2074_v33, 0 }
 0x5be   : > { %4394 = vmatpush3.bf16.msra.mxu0 %v2580_v2  ;;  %4400 = vmatpush3.bf16.msra.mxu1 %v2626_v3 }
 0x5bf   : > { %4405 = vmatprep.subr.bf16.mxu0 %v5171_v47  ;;  %4411 = vmatprep.subr.bf16.mxu1 %v5171_v47 }
 0x5d2   : > { %2543 = vadd.xlane.f32.xlu1 %v2542_v35 }
 0x5da   : > { %2546 = vadd.xlane.f32.xlu0 %v2545_v12 }
 0x5e3   : > { %1795 = vrot.lane.b32.xlu1 %v5955_v42, %s5173_s5 }
 0x607   : > { %2549 = vadd.xlane.f32.xlu1 %v2548_v15 }
 0x61a   : > { %v2529_v18 = vpop.xlane.xlu1 %2528 }
 0x61b   : > { %4744 = vrcp.f32 %v2529_v18 }
 0x61e   : > { %v2541_v19 = vpop.xlane.xlu0 %2540 }
 0x622   : > { %v2532_v20 = vpop.xlane.xlu0 %2531 }
 0x623   : > { %4746 = vrcp.f32 %v2532_v20 }
 0x625   : > { %v4745_v22 = vpop.eup %4744 }
 0x626   : > { %v2559_v23 = vmul.f32 %v4745_v22, %v5982_v53 }
 0x628   : > { %v2567_v25 = vpack.c.bf16 %v2559_v23, %v2559_v23 }
 0x62a   : > { %4396 = vmatmul.mubr.msk.bf16.vlgmr.msra.gmra.mrb[12].mxu0 %vm2478_vm2, %v2567_v25  ;;  %v2535_v9 = vpop.xlane.xlu1 %2534 }
 0x62b   : > { %4406 = vmatpush3.bf16.msra.mxu0 %v2672_v45  ;;  %4748 = vrcp.f32 %v2535_v9  ;;  %4407 = vmatprep.mubr.msk.bf16.mxu0 %vm5172_vm0, %v5171_v47 }
 0x62c   : > { %4417 = vmatprep.subr.bf16.mxu0 %v5171_v47 }
 0x62d   : > { %v4747_v31 = vpop.eup %4746 }
 0x62e   : > { %v2560_v32 = vmul.f32 %v4747_v31, %v5990_v0  ;;  %v1790_v44 = vpop.permute.xlu1 %1789 }
 0x62f   : > { %v1868_v48 = vcombine.high %v5955_v42, %v1790_v44 }
 0x630   : > { %v2568_v53 = vpack.c.bf16 %v2560_v32, %v2560_v32 }
 0x632   : > { %v2538_v34 = vpop.xlane.xlu0 %2537  ;;  %4402 = vmatmul.mubr.msk.bf16.vlgmr.msra.gmra.mrb[28].mxu1 %vm2478_vm2, %v2568_v53 }
 0x633   : > { %4750 = vrcp.f32 %v2538_v34  ;;  %4412 = vmatpush3.bf16.msra.mxu1 %v2718_v38  ;;  %4413 = vmatprep.mubr.msk.bf16.mxu1 %vm5172_vm0, %v5171_v47 }
 0x634   : > { %4423 = vmatprep.subr.bf16.mxu1 %v5171_v47  ;;  %4752 = vrcp.f32 %v2541_v19 }
 0x635   : > { %v4749_v36 = vpop.eup %4748 }
 0x636   : > { %v2561_v37 = vmul.f32 %v4749_v36, %v5994_v6  ;;  %v1867_v6 = vcombine.low %v5955_v42, %v1790_v44  ;;  %v1784_v50 = vpop.permute.xlu0 %1783 }
 0x638   : > { %v2569_v40 = vpack.c.bf16 %v2561_v37, %v2561_v37  ;;  %v1875_v51 = vrot.slane %v1867_v6, %v5796_v14 }
 0x63a   : > { %4408 = vmatmul.mubr.msk.bf16.vlgmr.msra.gmra.mrb[16].mxu0 %vm2478_vm2, %v2569_v40 }
 0x63b   : > { %4419 = vmatprep.mubr.msk.bf16.mxu0 %vm5172_vm0, %v5171_v47 }
 0x63d   : > { %v4751_v0 = vpop.eup %4750 }
 0x63e   : > { %v2562_v41 = vmul.f32 %v4751_v0, %v5998_v30  ;;  %v1882_v30 = vrot.slane %v1868_v48, %v5796_v14  ;;  %v4753_v19 = vpop.eup %4752 }
 0x63f   : > { %v2563_v33 = vmul.f32 %v4753_v19, %v5986_v62 }
 0x640   : > { %v2570_v43 = vpack.c.bf16 %v2562_v41, %v2562_v41 }
 0x641   : > { %v2571_v41 = vpack.c.bf16 %v2563_v33, %v2563_v33 }
 0x642   : > { %4414 = vmatmul.mubr.msk.bf16.vlgmr.msra.gmra.mrb[32].mxu1 %vm2478_vm2, %v2570_v43 }
 0x643   : > { %4425 = vmatprep.mubr.msk.bf16.mxu1 %vm5172_vm0, %v5171_v47 }
 0x65f   : > { %v2544_v46 = vpop.xlane.xlu1 %2543 }
 0x660   : > { %4754 = vrcp.f32 %v2544_v46 }
 0x663   : > { %v1796_v16 = vpop.permute.xlu1 %1795 }
 0x664   : > { %v1883_v57 = vcombine.low %v1784_v50, %v1796_v16  ;;  %v1884_v4 = vcombine.high %v1784_v50, %v1796_v16 }
 0x666   : > { %v1891_v5 = vrot.slane %v1883_v57, %v5796_v14  ;;  %v1898_v49 = vrot.slane %v1884_v4, %v5796_v14 }
 0x667   : > { %v2547_v12 = vpop.xlane.xlu0 %2546 }
 0x668   : > { %v1899_v26 = vcombine.low %v1875_v51, %v1891_v5  ;;  %v1900_v52 = vcombine.high %v1875_v51, %v1891_v5  ;;  %v1915_v55 = vcombine.low %v1882_v30, %v1898_v49  ;;  %v1916_v59 = vcombine.high %v1882_v30, %v1898_v49 }
 0x669   : > { %4756 = vrcp.f32 %v2547_v12 }
 0x66a   : > { %v1907_v42 = vrot.slane %v1899_v26, %v5799_v21  ;;  %v1914_v61 = vrot.slane %v1900_v52, %v5799_v21  ;;  %v1923_v17 = vrot.slane %v1915_v55, %v5799_v21  ;;  %v1930_v60 = vrot.slane %v1916_v59, %v5799_v21  ;;  %v4755_v25 = vpop.eup %4754 }
 0x66b   : > { %v2564_v34 = vmul.f32 %v4755_v25, %v6032_v11 }
 0x66c   : > { %v2003_v63 = vcombine.low %v1907_v42, %v1914_v61  ;;  %v4172_v1 = vcombine.high %v1907_v42, %v1914_v61  ;;  %v2019_v2 = vcombine.low %v1923_v17, %v1930_v60  ;;  %v4173_v3 = vcombine.high %v1923_v17, %v1930_v60  ;;  %v4680_v60 = vld [vmem:[%s5710_s27] sm:$0xff]  }
 0x66d   : > { %v2572_v43 = vpack.c.bf16 %v2564_v34, %v2564_v34  ;;  %v4684_v34 = vld [vmem:[%s5710_s27 + $0x20] sm:$0xff]  }
 0x66e   : > { %v2010_v7 = vrot.slane %v2003_v63, %v5796_v14  ;;  %v2018_v39 = vrot.slane %v4172_v1, %v5796_v14  ;;  %v2026_v10 = vrot.slane %v2019_v2, %v5796_v14  ;;  %v2034_v35 = vrot.slane %v4173_v3, %v5796_v14  ;;  %v4681_v63 = vld [vmem:[%s5710_s27 + $0x8] sm:$0xff]  }
 0x670   : > { %v2035_v8 = vcombine.low %v2010_v7, %v2018_v39  ;;  %v2051_v27 = vcombine.low %v2026_v10, %v2034_v35  ;;  %v2036_v15 = vcombine.high %v2010_v7, %v2018_v39  ;;  %v2052_v18 = vcombine.high %v2026_v10, %v2034_v35  ;;  %v4682_v7 = vld [vmem:[%s5710_s27 + $0x10] sm:$0xff]  }
 0x672   : > { %v2043_v20 = vrot.slane %v2035_v8, %v5799_v21  ;;  %v2059_v22 = vrot.slane %v2051_v27, %v5799_v21  ;;  %v2050_v23 = vrot.slane %v2036_v15, %v5799_v21  ;;  %v2066_v24 = vrot.slane %v2052_v18, %v5799_v21 }
 0x673   : > { %v4757_v44 = vpop.eup %4756 }
 0x674   : > { %v2067_v45 = vcombine.low %v2043_v20, %v2059_v22  ;;  %v2068_v9 = vcombine.high %v2043_v20, %v2059_v22  ;;  %v2069_v31 = vcombine.low %v2050_v23, %v2066_v24  ;;  %v2070_v32 = vcombine.high %v2050_v23, %v2066_v24  ;;  %v4683_v22 = vld [vmem:[%s5710_s27 + $0x18] sm:$0xff]  }
 0x675   : > { %v2565_v46 = vmul.f32 %v4757_v44, %v6036_v29  ;;  %v4685_v44 = vld [vmem:[%s5710_s27 + $0x28] sm:$0xff]  }
 0x676   : > { %v2075_v53 = vpack.c.bf16 %v2067_v45, %v2067_v45  ;;  %v2076_v38 = vpack.c.bf16 %v2068_v9, %v2068_v9  ;;  %v2077_v40 = vpack.c.bf16 %v2069_v31, %v2069_v31  ;;  %v2078_v0 = vpack.c.bf16 %v2070_v32, %v2070_v32 }
 0x677   : > { %v2573_v6 = vpack.c.bf16 %v2565_v46, %v2565_v46 }
 0x678   : > { %v2764_v36 = vsel %vm2578_vm3, %v2075_v53, 0  ;;  %v2810_v37 = vsel %vm2578_vm3, %v2076_v38, 0  ;;  %v2856_v62 = vsel %vm2578_vm3, %v2077_v40, 0  ;;  %v2902_v11 = vsel %vm2578_vm3, %v2078_v0, 0 }
 0x679   : > { %4418 = vmatpush3.bf16.msra.mxu0 %v2764_v36  ;;  %4424 = vmatpush3.bf16.msra.mxu1 %v2810_v37 }
 0x67a   : > { %4429 = vmatprep.subr.bf16.mxu0 %v5171_v47  ;;  %4435 = vmatprep.subr.bf16.mxu1 %v5171_v47 }
 0x67c   : > { %4420 = vmatmul.mubr.msk.bf16.vlgmr.msra.gmra.mrb[20].mxu0 %vm2478_vm2, %v2571_v41  ;;  %4426 = vmatmul.mubr.msk.bf16.vlgmr.msra.gmra.mrb[36].mxu1 %vm2478_vm2, %v2572_v43 }
 0x67d   : > { %4430 = vmatpush3.bf16.msra.mxu0 %v2856_v62  ;;  %4436 = vmatpush3.bf16.msra.mxu1 %v2902_v11 }
 0x67e   : > { %4431 = vmatprep.mubr.msk.bf16.mxu0 %vm5172_vm0, %v5171_v47  ;;  %4437 = vmatprep.mubr.msk.bf16.mxu1 %vm5172_vm0, %v5171_v47 }
 0x67f   : > { %4441 = vmatprep.subr.bf16.mxu0 %v5171_v47 }
 0x684   : > { %4432 = vmatmul.mubr.msk.bf16.vlgmr.msra.gmra.mrb[24].mxu0 %vm2478_vm2, %v2573_v6 }
 0x685   : > { %4457 = vmatprep.mubr.msk.bf16.mxu0 %vm5172_vm0, %v5171_v47  ;;  %4442 = vmatpush3.bf16.msra.mxu0 %v4680_v60 }
 0x686   : > { %4443 = vmatprep.subr.bf16.mxu0 %v5171_v47 }
 0x689   : > { %4444 = vmatpush3.bf16.msra.mxu0 %v4681_v63 }
 0x68a   : > { %4445 = vmatprep.subr.bf16.mxu0 %v5171_v47 }
 0x68d   : > { %4446 = vmatpush3.bf16.msra.mxu0 %v4682_v7 }
 0x68e   : > { %4447 = vmatprep.subr.bf16.mxu0 %v5171_v47 }
 0x691   : > { %4448 = vmatpush3.bf16.msra.mxu0 %v4683_v22 }
 0x692   : > { %4449 = vmatprep.subr.bf16.mxu0 %v5171_v47 }
 0x694   : > { %v2550_v48 = vpop.xlane.xlu1 %2549 }
 0x695   : > { %4758 = vrcp.f32 %v2550_v48  ;;  %4450 = vmatpush3.bf16.msra.mxu0 %v4684_v34 }
 0x696   : > { %4451 = vmatprep.subr.bf16.mxu0 %v5171_v47 }
 0x699   : > { %4452 = vmatpush3.bf16.msra.mxu0 %v4685_v44  ;;  %v4687_v44 = vld [vmem:[%s5710_s27 + $0x38] sm:$0xff]  }
 0x69a   : > { %4453 = vmatprep.subr.bf16.mxu0 %v5171_v47 }
 0x69f   : > { %v4759_v50 = vpop.eup %4758 }
 0x6a0   : > { %v2566_v16 = vmul.f32 %v4759_v50, %v6044_v13 }
 0x6a2   : > { %v2574_v29 = vpack.c.bf16 %v2566_v16, %v2566_v16 }
 0x6a4   : > { %4438 = vmatmul.mubr.msk.bf16.vlgmr.msra.gmra.mrb[40].mxu1 %vm2478_vm2, %v2574_v29 }
 0x6a5   : > { %3545 = vmatprep.mubr.bf16.mxu1 %v5170_v28 }
 0x6fd   : > { %v2616_v57 = vpop.f32.mrb[12].mxu0 }
 0x6fe   : > { %v4397_v4 = vpop.f32.mrb[13].mxu0 }
 0x6ff   : > { %v2619_v51 = vpop.f32.mrb[14].mxu0 }
 0x700   : > { %v4398_v30 = vpop.f32.mrb[15].mxu0 }
 0x705   : > { %v2662_v5 = vpop.f32.mrb[28].mxu1 }
 0x706   : > { %v4403_v49 = vpop.f32.mrb[29].mxu1 }
 0x707   : > { %v2665_v26 = vpop.f32.mrb[30].mxu1 }
 0x708   : > { %v4404_v52 = vpop.f32.mrb[31].mxu1 }
 0x70d   : > { %v2708_v55 = vpop.f32.mrb[16].mxu0 }
 0x70e   : > { %v2944_v59 = vcombine.low %v2616_v57, %v2708_v55  ;;  %v2945_v42 = vcombine.high %v2616_v57, %v2708_v55  ;;  %v4409_v13 = vpop.f32.mrb[17].mxu0 }
 0x70f   : > { %v2711_v61 = vpop.f32.mrb[18].mxu0 }
 0x710   : > { %v4410_v17 = vpop.f32.mrb[19].mxu0  ;;  %v2952_v10 = vrot.slane %v2944_v59, %v5796_v14  ;;  %v2959_v35 = vrot.slane %v2945_v42, %v5796_v14 }
 0x715   : > { %v2754_v28 = vpop.f32.mrb[32].mxu1 }
 0x716   : > { %v2960_v1 = vcombine.low %v2662_v5, %v2754_v28  ;;  %v2961_v2 = vcombine.high %v2662_v5, %v2754_v28  ;;  %v4415_v3 = vpop.f32.mrb[33].mxu1 }
 0x717   : > { %v2757_v39 = vpop.f32.mrb[34].mxu1 }
 0x718   : > { %v2968_v12 = vrot.slane %v2960_v1, %v5796_v14  ;;  %v2975_v8 = vrot.slane %v2961_v2, %v5796_v14  ;;  %v4416_v27 = vpop.f32.mrb[35].mxu1 }
 0x71a   : > { %v2976_v15 = vcombine.low %v2952_v10, %v2968_v12  ;;  %v2977_v18 = vcombine.high %v2952_v10, %v2968_v12  ;;  %v2992_v19 = vcombine.low %v2959_v35, %v2975_v8  ;;  %v2993_v20 = vcombine.high %v2959_v35, %v2975_v8 }
 0x71c   : > { %v2984_v23 = vrot.slane %v2976_v15, %v5799_v21  ;;  %v2991_v24 = vrot.slane %v2977_v18, %v5799_v21  ;;  %v3000_v25 = vrot.slane %v2992_v19, %v5799_v21  ;;  %v3007_v45 = vrot.slane %v2993_v20, %v5799_v21 }
 0x71e   : > { %v3080_v9 = vcombine.low %v2984_v23, %v2991_v24  ;;  %v4192_v31 = vcombine.high %v2984_v23, %v2991_v24  ;;  %v3096_v32 = vcombine.low %v3000_v25, %v3007_v45  ;;  %v4193_v33 = vcombine.high %v3000_v25, %v3007_v45 }
 0x720   : > { %v3087_v53 = vrot.slane %v3080_v9, %v5796_v14  ;;  %v3095_v38 = vrot.slane %v4192_v31, %v5796_v14  ;;  %v3103_v36 = vrot.slane %v3096_v32, %v5796_v14  ;;  %v3111_v37 = vrot.slane %v4193_v33, %v5796_v14  ;;  %v4686_v9 = vld [vmem:[%s5710_s27 + $0x30] sm:$0xff]  }
 0x721   : > { %4454 = vmatpush3.bf16.msra.mxu0 %v4686_v9  ;;  %v4694_v9 = vld [vmem:[%s5712_s9 + $0x20] ss:$8 sps:$4 sm:$0xff]  }
 0x722   : > { %v3113_v40 = vcombine.high %v3087_v53, %v3095_v38  ;;  %v3129_v0 = vcombine.high %v3103_v36, %v3111_v37  ;;  %v3112_v41 = vcombine.low %v3087_v53, %v3095_v38  ;;  %v3128_v43 = vcombine.low %v3103_v36, %v3111_v37  ;;  %4455 = vmatprep.subr.bf16.mxu0 %v5171_v47 }
 0x724   : > { %v6132_v62 = vrot.slane %v3113_v40, %v5799_v21  ;;  %v6135_v11 = vrot.slane %v3129_v0, %v5799_v21  ;;  %v6138_v46 = vrot.slane %v3112_v41, %v5799_v21  ;;  %v6141_v6 = vrot.slane %v3128_v43, %v5799_v21 }
 0x725   : > { %4456 = vmatpush3.bf16.msra.mxu0 %v4687_v44 }
 0x726   : > { %v3146_v48 = vcombine.low %v6132_v62, %v6135_v11  ;;  %v3144_v50 = vcombine.low %v6138_v46, %v6141_v6  ;;  %v3145_v16 = vcombine.high %v6138_v46, %v6141_v6  ;;  %v3147_v29 = vcombine.high %v6132_v62, %v6135_v11  ;;  %v4196_v46 = vld [vmem:[%s843_s23] ss:$0 sm:$0xff]  ;;  %s6464_s23 = scalar_lea.vmem %s6463_s25, %s5672_s24 }
 0x74f   : > { %v2800_v57 = vpop.f32.mrb[20].mxu0  ;;  %v2846_v4 = vpop.f32.mrb[36].mxu1 }
 0x750   : > { %v4421_v51 = vpop.f32.mrb[21].mxu0  ;;  %v4427_v30 = vpop.f32.mrb[37].mxu1 }
 0x751   : > { %v2803_v5 = vpop.f32.mrb[22].mxu0  ;;  %v2849_v49 = vpop.f32.mrb[38].mxu1 }
 0x752   : > { %v4422_v26 = vpop.f32.mrb[23].mxu0  ;;  %v4428_v52 = vpop.f32.mrb[39].mxu1 }
 0x757   : > { %v2892_v55 = vpop.f32.mrb[24].mxu0 }
 0x758   : > { %v3012_v59 = vcombine.low %v2800_v57, %v2892_v55  ;;  %v3013_v42 = vcombine.high %v2800_v57, %v2892_v55  ;;  %v4433_v13 = vpop.f32.mrb[25].mxu0 }
 0x759   : > { %v2895_v61 = vpop.f32.mrb[26].mxu0 }
 0x75a   : > { %v4434_v17 = vpop.f32.mrb[27].mxu0  ;;  %v3020_v3 = vrot.slane %v3012_v59, %v5796_v14  ;;  %v3027_v7 = vrot.slane %v3013_v42, %v5796_v14 }
 0x777   : > { %v2938_v60 = vpop.f32.mrb[40].mxu1 }
 0x778   : > { %v3028_v63 = vcombine.low %v2846_v4, %v2938_v60  ;;  %v3029_v28 = vcombine.high %v2846_v4, %v2938_v60  ;;  %v4439_v1 = vpop.f32.mrb[41].mxu1 }
 0x779   : > { %v2941_v2 = vpop.f32.mrb[42].mxu1 }
 0x77a   : > { %v3036_v39 = vrot.slane %v3028_v63, %v5796_v14  ;;  %v3043_v10 = vrot.slane %v3029_v28, %v5796_v14  ;;  %v4440_v35 = vpop.f32.mrb[43].mxu1 }
 0x77b   : > { %v4688_v35 = vld [vmem:[%s5712_s9] ss:$8 sps:$4 sm:$0xff]  }
 0x77c   : > { %v3044_v12 = vcombine.low %v3020_v3, %v3036_v39  ;;  %v3045_v8 = vcombine.high %v3020_v3, %v3036_v39  ;;  %v3060_v27 = vcombine.low %v3027_v7, %v3043_v10  ;;  %v3061_v15 = vcombine.high %v3027_v7, %v3043_v10  ;;  %v4776_v3 = vld [vmem:[#allocation2] sm:$0xff]  ;;  %v4777_v39 = vld [vmem:[#allocation2 + $0x8] sm:$0xff] }
 0x77e   : > { %v3052_v18 = vrot.slane %v3044_v12, %v5799_v21  ;;  %v3059_v19 = vrot.slane %v3045_v8, %v5799_v21  ;;  %v3068_v20 = vrot.slane %v3060_v27, %v5799_v21  ;;  %v3075_v22 = vrot.slane %v3061_v15, %v5799_v21  ;;  %v4690_v12 = vld [vmem:[%s5712_s9 + $0x4] ss:$8 sps:$4 sm:$0xff]   ;;  %v4693_v8 = vld [vmem:[%s5712_s9 + $0x14] ss:$8 sps:$4 sm:$0xff]   ;;  %v4691_v27 = vld [vmem:[%s5712_s9 + $0x10] ss:$8 sps:$4 sm:$0xff]  }
 0x77f   : > { %3513 = vmatprep.subr.bf16.mxu1 %v4690_v12 }
 0x780   : > { %v3148_v23 = vcombine.low %v3052_v18, %v3059_v19  ;;  %v4194_v24 = vcombine.high %v3052_v18, %v3059_v19  ;;  %v3164_v25 = vcombine.low %v3068_v20, %v3075_v22  ;;  %v4195_v45 = vcombine.high %v3068_v20, %v3075_v22  ;;  %3514 = vmatpush1.bf16.msra.mxu1 %v4688_v35 }
 0x781   : > { %3515 = vmatprep.subr.bf16.mxu1 %v4693_v8 }
 0x782   : > { %v3155_v31 = vrot.slane %v3148_v23, %v5796_v14  ;;  %v3163_v32 = vrot.slane %v4194_v24, %v5796_v14  ;;  %v3171_v33 = vrot.slane %v3164_v25, %v5796_v14  ;;  %v3179_v34 = vrot.slane %v4195_v45, %v5796_v14  ;;  %v4696_v45 = vld [vmem:[%s5712_s9 + $0x24] ss:$8 sps:$4 sm:$0xff]  }
 0x784   : > { %v3181_v53 = vcombine.high %v3155_v31, %v3163_v32  ;;  %v3197_v38 = vcombine.high %v3171_v33, %v3179_v34  ;;  %v3180_v36 = vcombine.low %v3155_v31, %v3163_v32  ;;  %v3196_v37 = vcombine.low %v3171_v33, %v3179_v34  ;;  %3516 = vmatpush1.bf16.msra.mxu1 %v4691_v27  ;;  %v4699_v31 = vld [vmem:[%s5712_s9 + $0x34] ss:$8 sps:$4 sm:$0xff]   ;;  %v4697_v32 = vld [vmem:[%s5712_s9 + $0x30] ss:$8 sps:$4 sm:$0xff]   ;;  %v4702_v33 = vld [vmem:[%s5712_s9 + $0x44] ss:$8 sps:$4 sm:$0xff]  }
 0x785   : > { %3517 = vmatprep.subr.bf16.mxu1 %v4696_v45  ;;  %v4700_v34 = vld [vmem:[%s5712_s9 + $0x40] ss:$8 sps:$4 sm:$0xff]  }
 0x786   : > { %v3195_v40 = vrot.slane %v3181_v53, %v5799_v21  ;;  %v3211_v0 = vrot.slane %v3197_v38, %v5799_v21  ;;  %v3188_v41 = vrot.slane %v3180_v36, %v5799_v21  ;;  %v3204_v43 = vrot.slane %v3196_v37, %v5799_v21  ;;  %v4705_v53 = vld [vmem:[%s5712_s9 + $0x54] ss:$8 sps:$4 sm:$0xff]   ;;  %v4703_v38 = vld [vmem:[%s5712_s9 + $0x50] ss:$8 sps:$4 sm:$0xff]   ;;  %v4708_v36 = vld [vmem:[%s5712_s9 + $0x64] ss:$8 sps:$4 sm:$0xff]  }
 0x787   : > { %v4706_v37 = vld [vmem:[%s5712_s9 + $0x60] ss:$8 sps:$4 sm:$0xff]  }
 0x788   : > { %v3214_v57 = vcombine.low %v3195_v40, %v3211_v0  ;;  %v3213_v4 = vcombine.high %v3188_v41, %v3204_v43  ;;  %v3212_v51 = vcombine.low %v3188_v41, %v3204_v43  ;;  %v3215_v14 = vcombine.high %v3195_v40, %v3211_v0  ;;  %3518 = vmatpush1.bf16.msra.mxu1 %v4694_v9  ;;  %v4711_v40 = vld [vmem:[%s5712_s9 + $0x74] ss:$8 sps:$4 sm:$0xff]   ;;  %v4709_v0 = vld [vmem:[%s5712_s9 + $0x70] ss:$8 sps:$4 sm:$0xff]  }
 0x789   : > { %3519 = vmatprep.subr.bf16.mxu1 %v4699_v31 }
 0x78a   : > { %v4638_v30 = vpack.i.bf16 %v3214_v57, %v3146_v48  ;;  %v4633_v5 = vpack.i.bf16 %v3213_v4, %v3145_v16  ;;  %v4643_v47 = vpack.i.bf16 %v3215_v14, %v3147_v29 }
 0x78c   : > { %4639 = vrot.lane.b32.xlu1 %v4638_v30, %s5175_s14  ;;  %4634 = vrot.lane.b32.xlu0 %v4633_v5, %s5173_s5  ;;  %v4205_v30 = vld [vmem:[%s6464_s23] ss:$0 sm:$0xff] }
 0x78d   : > { %3520 = vmatpush1.bf16.msra.mxu1 %v4697_v32 }
 0x78e   : > { %3521 = vmatprep.subr.bf16.mxu1 %v4702_v33 }
 0x790   : > { %4644 = vrot.lane.b32.xlu0 %v4643_v47, %s5174_s12 }
 0x791   : > { %3522 = vmatpush1.bf16.msra.mxu1 %v4700_v34 }
 0x792   : > { %3523 = vmatprep.subr.bf16.mxu1 %v4705_v53 }
 0x795   : > { %3524 = vmatpush1.bf16.msra.mxu1 %v4703_v38 }
 0x796   : > { %3525 = vmatprep.subr.bf16.mxu1 %v4708_v36 }
 0x799   : > { %3526 = vmatpush1.bf16.msra.mxu1 %v4706_v37 }
 0x79a   : > { %3527 = vmatprep.subr.bf16.mxu1 %v4711_v40 }
 0x79d   : > { %3528 = vmatpush1.bf16.msra.mxu1 %v4709_v0 }
 0x7fe   : > { %v4640_v49 = vpop.permute.xlu1 %4639  ;;  %v4635_v21 = vpop.permute.xlu0 %4634 }
 0x7ff   : > { %v4637_v26 = vunpack.i.h.bf16 %v4635_v21  ;;  %v4636_v52 = vunpack.i.l.bf16 %v4635_v21  ;;  %v4642_v55 = vunpack.i.h.bf16 %v4640_v49  ;;  %v4641_v59 = vunpack.i.l.bf16 %v4640_v49 }
 0x801   : > { %v3240_v62 = vsel %vm2079_vm1, %v3144_v50, %v4636_v52  ;;  %v3241_v11 = vsel %vm2079_vm1, %v3212_v51, %v4637_v26  ;;  %v4206_v26 = vld [vmem:[%s6466_s8] ss:$0 sm:$0xff] }
 0x802   : > { %v4645_v48 = vpop.permute.xlu0 %4644  ;;  %v3243_v42 = vsel %vm3242_vm4, %v3240_v62, %v4641_v59  ;;  %v3244_v13 = vsel %vm3242_vm4, %v3241_v11, %v4642_v55  ;;  %v4712_v11 = vld [vmem:[%s5714_s22 + $0x40] sm:$0xff]  }
 0x803   : > { %v4647_v16 = vunpack.i.h.bf16 %v4645_v48  ;;  %v4646_v29 = vunpack.i.l.bf16 %v4645_v48  ;;  %v4713_v48 = vld [vmem:[%s5714_s22] sm:$0xff]   ;;  %4303 = vmatprep.subr.bf16.mxu0 %v4712_v11 }
 0x805   : > { %v3246_v61 = vsel %vm3245_vm5, %v3243_v42, %v4646_v29  ;;  %v3247_v17 = vsel %vm3245_vm5, %v3244_v13, %v4647_v16  ;;  %v4714_v16 = vld [vmem:[%s5714_s22 + $0x48] sm:$0xff]   ;;  %v4716_v42 = vld [vmem:[%s5714_s22 + $0x50] sm:$0xff]  }
 0x806   : > { %v3248_v60 = vpack.c.bf16 %v3247_v17, %v3246_v61  ;;  %v4715_v29 = vld [vmem:[%s5714_s22 + $0x8] sm:$0xff]   ;;  %v4717_v13 = vld [vmem:[%s5714_s22 + $0x10] sm:$0xff]   ;;  %v4718_v61 = vld [vmem:[%s5714_s22 + $0x58] sm:$0xff]  }
 0x807   : > { %v4719_v17 = vld [vmem:[%s5714_s22 + $0x18] sm:$0xff]  }
 0x808   : > { %4458 = vmatmul.mubr.bf16.vlgmr.msra.gmra.mrb[28].mxu0 %v3248_v60  ;;  %v4720_v60 = vld [vmem:[%s5714_s22 + $0x60] sm:$0xff]  }
 0x809   : > { %4304 = vmatpush3.bf16.msra.mxu0 %v4713_v48 }
 0x80a   : > { %4305 = vmatprep.subr.bf16.mxu0 %v4714_v16 }
 0x80d   : > { %4306 = vmatpush3.bf16.msra.mxu0 %v4715_v29 }
 0x80e   : > { %4307 = vmatprep.subr.bf16.mxu0 %v4716_v42  ;;  %v4223_v42 = vld [vmem:[%s856_s15] ss:$0 sm:$0xff]  ;;  %s3812_s15 = sadd.s32 1, %s6468_s17 }
 0x80f   : > { %p4242_p3 = scmp.ge.s32.totalorder %s3812_s15, 2 }
 0x811   : > { %4308 = vmatpush3.bf16.msra.mxu0 %v4717_v13 }
 0x812   : > { %4309 = vmatprep.subr.bf16.mxu0 %v4718_v61 }
 0x815   : > { %4310 = vmatpush3.bf16.msra.mxu0 %v4719_v17 }
 0x816   : > { %4311 = vmatprep.subr.bf16.mxu0 %v4720_v60 }
 0x8db   : > { %v3354_v6 = vpop.f32.mrb[28].mxu0 }
 0x8dc   : > { %v3355_v50 = vadd.f32 %v4196_v46, %v3354_v6  ;;  %v4459_v63 = vpop.f32.mrb[29].mxu0  ;;  %v4722_v6 = vld [vmem:[%s5714_s22 + $0x68] sm:$0xff]  }
 0x8dd   : > { %v3357_v28 = vpop.f32.mrb[30].mxu0  ;;  %v4724_v63 = vld [vmem:[%s5714_s22 + $0x70] sm:$0xff]  }
 0x8de   : > { %v3358_v1 = vadd.f32 %v4196_v46, %v3357_v28  ;;  %v4460_v2 = vpop.f32.mrb[31].mxu0  ;;  %v3361_v7 = vadd.f32 %v4776_v3, %v3355_v50  ;;  %v4721_v46 = vld [vmem:[%s5714_s22 + $0x20] sm:$0xff]   ;;  %v4723_v50 = vld [vmem:[%s5714_s22 + $0x28] sm:$0xff]   ;;  %v4725_v28 = vld [vmem:[%s5714_s22 + $0x30] sm:$0xff]  }
 0x8df   : > { %4312 = vmatpush3.bf16.msra.mxu0 %v4721_v46  ;;  %v4727_v2 = vld [vmem:[%s5714_s22 + $0x38] sm:$0xff]  }
 0x8e0   : > { %3365 = vadd.xlane.f32.xlu1 %v3361_v7  ;;  %v3362_v10 = vadd.f32 %v4777_v39, %v3358_v1  ;;  %4313 = vmatprep.subr.bf16.mxu0 %v4722_v6  ;;  %v4726_v1 = vld [vmem:[%s5714_s22 + $0x78] sm:$0xff]  }
 0x8e1   : > { %v3421_v3 = vld [vmem:[%s5696_s16] sm:$0x3] }
 0x8e2   : > { %3367 = vadd.xlane.f32.xlu0 %v3362_v10  ;;  %v3430_v39 = vrot.slane %v3421_v3, %v958_v56 }
 0x8e3   : > { %4314 = vmatpush3.bf16.msra.mxu0 %v4723_v50 }
 0x8e4   : > { %4315 = vmatprep.subr.bf16.mxu0 %v4724_v63 }
 0x8e7   : > { %4316 = vmatpush3.bf16.msra.mxu0 %v4725_v28 }
 0x8e8   : > { %4317 = vmatprep.subr.bf16.mxu0 %v4726_v1 }
 0x8eb   : > { %4318 = vmatpush3.bf16.msra.mxu0 %v4727_v2 }
 0x96d   : > { %v3366_v15 = vpop.xlane.xlu1 %3365 }
 0x96e   : > { %v3370_v18 = vmul.f32 0.0078125, %v3366_v15 }
 0x96f   : > { %v3368_v19 = vpop.xlane.xlu0 %3367 }
 0x970   : > { %v3372_v20 = vsub.f32 %v3361_v7, %v3370_v18  ;;  %v3371_v22 = vmul.f32 0.0078125, %v3368_v19  ;;  %v3426_v7 = vrot.slane %v3421_v3, %v954_v58 }
 0x972   : > { %v3373_v23 = vsub.f32 %v3362_v10, %v3371_v22  ;;  %v3374_v24 = vmul.f32 %v3372_v20, %v3372_v20 }
 0x974   : > { %3376 = vadd.xlane.f32.xlu0 %v3374_v24  ;;  %v3375_v25 = vmul.f32 %v3373_v23, %v3373_v23 }
 0x976   : > { %3378 = vadd.xlane.f32.xlu1 %v3375_v25 }
 0xa01   : > { %v3377_v41 = vpop.xlane.xlu0 %3376 }
 0xa02   : > { %v3380_v43 = vmul.f32 0.0078125, %v3377_v41 }
 0xa03   : > { %v3379_v44 = vpop.xlane.xlu1 %3378 }
 0xa04   : > { %v3382_v57 = vadd.f32 1e-12, %v3380_v43  ;;  %v3381_v4 = vmul.f32 0.0078125, %v3379_v44 }
 0xa06   : > { %4760 = vrsqrt.f32 %v3382_v57  ;;  %v3383_v51 = vadd.f32 1e-12, %v3381_v4 }
 0xa08   : > { %4762 = vrsqrt.f32 %v3383_v51 }
 0xa10   : > { %v4761_v14 = vpop.eup %4760 }
 0xa11   : > { %v3386_v5 = vmul.f32 %v4761_v14, %v3372_v20 }
 0xa12   : > { %v4763_v47 = vpop.eup %4762 }
 0xa13   : > { %v3387_v49 = vmul.f32 %v4763_v47, %v3373_v23  ;;  %v3394_v21 = vmul.f32 %v4205_v30, %v3386_v5 }
 0xa15   : > { %v3395_v52 = vmul.f32 %v4205_v30, %v3387_v49  ;;  %v6213_v55 = vadd.f32 %v4206_v26, %v3394_v21 }
 0xa17   : > { %v6215_v59 = vadd.f32 %v4206_v26, %v3395_v52 }
 0xa19   : > { %v3404_v62 = vpack.c.bf16 %v6215_v59, %v6213_v55 }
 0xa1b   : > { %3546 = vmatmul.mubr.bf16.vlgmr.msra.gmra.mrb[44].mxu1 %v3404_v62 }
 0xaee   : > { %v3547_v10 = vpop.f32.mrb[44].mxu1 }
 0xaef   : > { %v3548_v35 = vadd.f32 %v3547_v10, %v3426_v7  ;;  %v3549_v12 = vpop.f32.mrb[45].mxu1 }
 0xaf0   : > { %v3550_v8 = vadd.f32 %v3549_v12, %v3430_v39  ;;  %v3551_v27 = vpop.f32.mrb[46].mxu1 }
 0xaf1   : > { %v3560_v15 = vmul.f32 0.044715, %v3548_v35  ;;  %v3552_v18 = vadd.f32 %v3551_v27, %v3426_v7  ;;  %v3553_v19 = vpop.f32.mrb[47].mxu1  ;;  %v3556_v14 = vmul.f32 0.5, %v3548_v35 }
 0xaf2   : > { %v3561_v20 = vmul.f32 0.044715, %v3550_v8  ;;  %v3554_v22 = vadd.f32 %v3553_v19, %v3430_v39  ;;  %v3557_v47 = vmul.f32 0.5, %v3550_v8 }
 0xaf3   : > { %v3564_v23 = vmul.f32 %v3560_v15, %v3548_v35  ;;  %v3562_v24 = vmul.f32 0.044715, %v3552_v18  ;;  %v3558_v30 = vmul.f32 0.5, %v3552_v18 }
 0xaf4   : > { %v3565_v25 = vmul.f32 %v3561_v20, %v3550_v8  ;;  %v3563_v45 = vmul.f32 0.044715, %v3554_v22  ;;  %v3559_v49 = vmul.f32 0.5, %v3554_v22  ;;  %v4240_v20 = vld [vmem:[%s859_s26] ss:$0 sm:$0xff] }
 0xaf5   : > { %v3568_v9 = vmul.f32 %v3564_v23, %v3548_v35  ;;  %v3566_v31 = vmul.f32 %v3562_v24, %v3552_v18  ;;  %v4241_v24 = vld [vmem:[%s862_s7] ss:$0 sm:$0xff] }
 0xaf6   : > { %v3569_v58 = vmul.f32 %v3565_v25, %v3550_v8  ;;  %v3567_v32 = vmul.f32 %v3563_v45, %v3554_v22 }
 0xaf7   : > { %v3572_v54 = vadd.f32 %v3568_v9, %v3548_v35  ;;  %v3570_v56 = vmul.f32 %v3566_v31, %v3552_v18 }
 0xaf8   : > { %v3571_v33 = vmul.f32 %v3567_v32, %v3554_v22  ;;  %v3573_v34 = vadd.f32 %v3569_v58, %v3550_v8 }
 0xaf9   : > { %v3576_v53 = vmul.f32 0.7978846, %v3572_v54  ;;  %v3574_v38 = vadd.f32 %v3570_v56, %v3552_v18 }
 0xafa   : > { %v3575_v36 = vadd.f32 %v3571_v33, %v3554_v22  ;;  %v3577_v37 = vmul.f32 0.7978846, %v3573_v34 }
 0xafb   : > { %4764 = vtanh.f32 %v3576_v53  ;;  %v3578_v40 = vmul.f32 0.7978846, %v3574_v38 }
 0xafc   : > { %v3579_v0 = vmul.f32 0.7978846, %v3575_v36  ;;  %4766 = vtanh.f32 %v3577_v37 }
 0xafd   : > { %4768 = vtanh.f32 %v3578_v40 }
 0xafe   : > { %4770 = vtanh.f32 %v3579_v0 }
 0xb05   : > { %v4765_v41 = vpop.eup %4764 }
 0xb06   : > { %v4767_v43 = vpop.eup %4766  ;;  %v3584_v44 = vadd.f32 1.0, %v4765_v41 }
 0xb07   : > { %v4769_v57 = vpop.eup %4768  ;;  %v3585_v4 = vadd.f32 1.0, %v4767_v43 }
 0xb08   : > { %v4771_v51 = vpop.eup %4770  ;;  %v3586_v5 = vadd.f32 1.0, %v4769_v57  ;;  %v3588_v26 = vmul.f32 %v3584_v44, %v3556_v14 }
 0xb09   : > { %v3587_v21 = vadd.f32 1.0, %v4771_v51  ;;  %v3589_v62 = vmul.f32 %v3585_v4, %v3557_v47 }
 0xb0a   : > { %v3590_v52 = vmul.f32 %v3586_v5, %v3558_v30 }
 0xb0b   : > { %v3591_v11 = vmul.f32 %v3587_v21, %v3559_v49 }
 0xb0c   : > { %v3592_v48 = vpack.c.bf16 %v3590_v52, %v3588_v26 }
 0xb0d   : > { %v3593_v16 = vpack.c.bf16 %v3591_v11, %v3589_v62 }
 0xb0f   : > { %3761 = vmatprep.mubr.bf16.mxu0 %v3593_v16 }
 0xb10   : > { %3762 = vmatmul.mubr.bf16.vlgmr.msra.gmra.mrb[32].mxu0 %v3592_v48 }
 0xbe3   : > { %v4319_v29 = vpop.f32.mrb[32].mxu0 }
 0xbe4   : > { %v4320_v13 = vpop.f32.mrb[33].mxu0 }
 0xbe5   : > { %v4321_v61 = vadd.f32 %v4320_v13, %v4319_v29  ;;  %v4322_v17 = vpop.f32.mrb[34].mxu0 }
 0xbe6   : > { %v4323_v60 = vpop.f32.mrb[35].mxu0 }
 0xbe7   : > { %v3764_v46 = vadd.f32 %v4321_v61, %v4223_v42  ;;  %v4324_v6 = vadd.f32 %v4323_v60, %v4322_v17 }
 0xbe9   : > { %v3767_v50 = vadd.f32 %v4324_v6, %v4223_v42  ;;  %v3770_v63 = vadd.f32 %v3764_v46, %v6213_v55 }
 0xbeb   : > { %3774 = vadd.xlane.f32.xlu0 %v3770_v63  ;;  %v3771_v28 = vadd.f32 %v3767_v50, %v6215_v59 }
 0xbed   : > { %3776 = vadd.xlane.f32.xlu1 %v3771_v28 }
 0xc78   : > { %v3775_v1 = vpop.xlane.xlu0 %3774 }
 0xc79   : > { %v3778_v2 = vmul.f32 0.0078125, %v3775_v1 }
 0xc7a   : > { %v3777_v3 = vpop.xlane.xlu1 %3776 }
 0xc7b   : > { %v3780_v7 = vsub.f32 %v3770_v63, %v3778_v2  ;;  %v3779_v39 = vmul.f32 0.0078125, %v3777_v3 }
 0xc7d   : > { %v3781_v10 = vsub.f32 %v3771_v28, %v3779_v39  ;;  %v3782_v35 = vmul.f32 %v3780_v7, %v3780_v7 }
 0xc7f   : > { %3784 = vadd.xlane.f32.xlu0 %v3782_v35  ;;  %v3783_v12 = vmul.f32 %v3781_v10, %v3781_v10 }
 0xc81   : > { %3786 = vadd.xlane.f32.xlu1 %v3783_v12 }
 0xd0c   : > { %v3785_v8 = vpop.xlane.xlu0 %3784 }
 0xd0d   : > { %v3788_v27 = vmul.f32 0.0078125, %v3785_v8 }
 0xd0e   : > { %v3787_v55 = vpop.xlane.xlu1 %3786 }
 0xd0f   : > { %v3790_v15 = vadd.f32 1e-12, %v3788_v27  ;;  %v3789_v18 = vmul.f32 0.0078125, %v3787_v55 }
 0xd11   : > { %4772 = vrsqrt.f32 %v3790_v15  ;;  %v3791_v59 = vadd.f32 1e-12, %v3789_v18 }
 0xd13   : > { %4774 = vrsqrt.f32 %v3791_v59 }
 0xd1b   : > { %v4773_v19 = vpop.eup %4772 }
 0xd1c   : > { %v3794_v22 = vmul.f32 %v4773_v19, %v3780_v7  ;;  %3816 = sbr.rel (%p4242_p3) target bundleno = 3365 (0xd25), region = 124 }
 0xd1d   : > { %v4775_v23 = vpop.eup %4774 }
 0xd1e   : > { %v3802_v25 = vmul.f32 %v4240_v20, %v3794_v22  ;;  %v3795_v45 = vmul.f32 %v4775_v23, %v3781_v10 }
 0xd20   : > { %v3810_v9 = vadd.f32 %v4241_v24, %v3802_v25  ;;  %v3803_v31 = vmul.f32 %v4240_v20, %v3795_v45 }
 0xd22   : > { %v3811_v58 = vadd.f32 %v4241_v24, %v3803_v31  ;;  %3817 = vst [vmem:[#allocation2] sm:$0xff] (!%p4242_p3), %v3810_v9 }
 0xd24   : > { %3818 = vst [vmem:[#allocation2 + $0x8] sm:$0xff] %v3811_v58 }
 0xd25 PF: > { %s6471_s12 = sld [smem:[#allocation29_spill]] }
 0xd2b   : > { %s3819_s14 = sld [smem:[#allocation5 + %s6471_s12]] }
 0xd31   : > { %p4243_p11 = scmp.ne.s32.totalorder %s3819_s14, 1 }
 0xd32   : > { %3824 = vst [vmem:[%s5716_s4] sm:$0xff] (!%p4243_p11), %v3810_v9  ;;  %3825 = vst [vmem:[%s5716_s4 + $0x8] sm:$0xff] (!%p4243_p11), %v3811_v58 }
 0xd33   : > { %3823 = sbr.rel (%p4243_p11) target bundleno = 3386 (0xd3a), region = 128 }
 0xd3a PF: > { %s6472_s24 = sld [smem:[#allocation31_spill]]  ;;  %s6474_s26 = sld [smem:[#allocation29_spill]] }
 0xd3b   : > { %s6475_s7 = sld [smem:[#allocation27_spill]]  ;;  %s3843_s1 = sshll.u32 %s5716_s4, 4  ;;  %s6267_s1 = int_to_ptr.vmem [resolvable:$true] %s3843_s1 }
 0xd3c   : > { %s6476_s23 = sld [smem:[#allocation53_spill]]  ;;  %s5030_s16 = scalar_lea.vmem %s6267_s1, 256 }
 0xd3d   : > { %p5031_p7 = scmp.ne.s32.totalorder %s6267_s1, %s5030_s16  ;;  %s5178_s4 = smov [#allocation18]  }
 0xd3e   : > { %s5034_s13 = sshll.u32 %s5178_s4, 4  ;;  %s5035_s13 = int_to_ptr.vmem [resolvable:$false] %s5034_s13 }
 0xd3f   : > { %s5036_s28 = scalar_lea.vmem %s5035_s13, 512  ;;  %p5037_p4 = scmp.lt.s32.totalorder %s6267_s1, %s5035_s13 }
 0xd40   : > { %p6473_p9 = scmp.ne.s32.totalorder %s6472_s24, 0  ;;  %p5038_p10 = scmp.lt.s32.totalorder %s5036_s28, %s5030_s16 }
 0xd41   : > { %s6478_s6 = sand.u32 1, %s6475_s7  }
 0xd42   : > { %s4489_s10 = scalar_select %p6473_p9, [#allocation4], [#allocation19] }
 0xd43   : > { %s6498_s26 = smov (!%p6473_p9, %s6474_s26), 0  ;;  %s6477_s11 = smov %s6476_s23 }
 0xd44   : > { %s3834_s0 = sld [smem:[%s4489_s10 + %s6498_s26]]  ;;  %s6276_s8 = scalar_lea.sflag [#allocation8], %s6478_s6 }
 0xd45   : > { %p5032_p0 = pnand %p5031_p7, %p6473_p9  ;;  %p5039_p13 = por %p5038_p10, %p5037_p4 }
 0xd47   : > { %p5033_p6 = pneg %p5032_p0 }
 0xd49   : > { %p5040_p1 = pnand %p5039_p13, %p5033_p6 }
 0xd4a   : > { %s4252_s29 = sshll.u32 %s3834_s0, 8 }
 0xd4b   : > { %s6272_s30 = scalar_lea.hbm %s6476_s23, %s4252_s29 }
 0xd4c   : > { %5043 = shalt.err (!%p5040_p1)
}
 0xd4d   : > { %s5044_s17 = scalar_lea.hbm %s6272_s30, 256  ;;  %s5048_s19 = scalar_lea.hbm %s6477_s11, 512 }
 0xd4e   : > { %p5045_p8 = scmp.ne.s32.totalorder %s6272_s30, %s5044_s17  ;;  %p5049_p2 = scmp.lt.u32.totalorder %s6272_s30, %s6477_s11 }
 0xd4f   : > { %p5050_p3 = scmp.lt.u32.totalorder %s5048_s19, %s5044_s17  ;;  %p5052_p7 = scmp.lt.u32.totalorder %s5044_s17, %s6272_s30 }
 0xd50   : > { %p5046_p5 = pnand %p5045_p8, %p6473_p9 }
 0xd51   : > { %p5051_p11 = por %p5050_p3, %p5049_p2 }
 0xd52   : > { %p5047_p12 = pneg %p5046_p5 }
 0xd53   : > { %p5053_p0 = por %p5052_p7, %p5051_p11 }
 0xd55   : > { %p5054_p6 = pnand %p5053_p0, %p5047_p12 }
 0xd57   : > { %5057 = shalt.err (!%p5054_p6)
}
 0xd58   : > { %s5179_s22 = smov 128   ;;  %s5180_s5 = smov 8  }
 0xd59   : > { %4491 = dma.vmem_to_hbm [thread:$0]  (%p6473_p9), %s6267_s1, 256, %s6272_s30, %s6276_s8, %s5179_s22, %s5179_s22, %s5180_s5  }
 0xd5a PF: > { %s6479_s12 = sld [smem:[#allocation26_spill]]  ;;  %s6480_s14 = sld [smem:[#allocation32_spill]] }
 0xd5b   : > { %s6481_s26 = sld [smem:[#allocation30_spill]] }
 0xd60   : > { %s3858_s7 = sand.u32 1, %s6479_s12   ;;  %p6482_p4 = scmp.ne.s32.totalorder %s6480_s14, 0 }
 0xd61   : > { %p6483_p10 = scmp.ge.s32.totalorder %s6481_s26, 2  ;;  %s3859_s10 = scalar_lea.sflag [#allocation8], %s3858_s7 }
 0xd63   : > { %p4520_p13 = pnand %p6483_p10, %p6482_p4 }
 0xd65   : > { %5113 = dma.done.wait (!%p4520_p13), %s3859_s10, 256  }
 0xd66   : > { %5115 = vsyncadd (!%p4520_p13), %s3859_s10, 4294967040  ;;  %s40_s23 = sadd.s32 1, %s6481_s26   ;;  %s6484_s29 = sld [smem:[#allocation27_spill]] }
 0xd67   : > { %p37_p1 = scmp.ge.s32.totalorder %s40_s23, 4   ;;  %s6485_s0 = sld [smem:[#allocation35_spill]] }
 0xd68   : > { %s6486_s24 = sld [smem:[#allocation28_spill]]  ;;  %s6487_s22 = sld [smem:[#allocation34_spill]] }
 0xd69   : > { %s6488_s18 = sld [smem:[#allocation33_spill]]  ;;  %s6489_s19 = smov %s5126_s2 }
 0xd6a   : > { %s6491_s20 = smov %s5134_s21  ;;  %s6493_s1 = smov %s5146_s3 }
 0xd6b   :  { %39 = sbr.rel (!%p37_p1) target bundleno = 41 (0x29), region = 215 }
 0xd6d   : > { %s6490_s2 = smov %s6485_s0 }
 0xd6e   : > { %s6492_s21 = smov %s6486_s24 }
 0xd6f   : > { %s6494_s3 = smov %s6488_s18 }
 0xd72   :  { %3864 = vsyncpa [#allocation7], 1 }
 0xd73   :  { %3866 = vsyncpa [#allocation7 + $0x1], 1 }
 0xd74   :  { %3867 = vsyncpa [#allocation10], 1 }
 0xd75   :  { %3868 = vsyncpa [#allocation13], 1 }
 0xd76   :  { %3869 = vsyncpa [#allocation8], 1 }
 0xd77   :  { %3871 = vsyncpa [#allocation8 + $0x1], 1 }

</bundles_post_ra>
